<compile_context>
chip_gen: v6e
topology: v6e:2x2x1
jax: 0.10.0
libtpu: 0.0.40
codegen_flags: <defaults>
</compile_context>

<pallas_src>
import math

import jax
import jax.numpy as jnp
import numpy as np
from jax.experimental import pallas as pl
from jax.experimental.pallas import tpu as pltpu

# ---- small synthetic CLIP text-tower config -------------------------------
B = 2          # batch of prompts
L = 8          # context length
D = 32         # transformer width
H = 4          # attention heads
HD = D // H    # head dim
FF = 4 * D     # MLP hidden dim
E = 32         # text_projection output dim
N_LAYERS = 2   # transformer depth
LN_EPS = 1e-5
NEG = -1e9     # finite large-negative for masked scores (fp16/bf16 safe)


def _layernorm(x, g, b):
    mu = jnp.mean(x, axis=-1, keepdims=True)
    var = jnp.mean((x - mu) ** 2, axis=-1, keepdims=True)
    return (x - mu) * jax.lax.rsqrt(var + LN_EPS) * g + b


# ---------------------------------------------------------------------------
# Kernel: one (batch, layer) grid step = one transformer block for one prompt.
# ---------------------------------------------------------------------------
def text_encoder_kernel(eot_ref,                    # SMEM (B,) scalar prefetch
                        x_in_ref, pos_ref,          # (L, D) bf16 each
                        wqkv_ref,                   # (3*H, D+8, HD) bf16 (+bias row)
                        wo_ref,                     # (H, HD, D) bf16
                        w1_ref,                     # (D+8, FF) bf16 (+bias row)
                        w2_ref,                     # (FF+8, D) bf16 (+bias row)
                        vec_ref,                    # (8, D) f32: ln1_g,ln1_b,ln2_g,ln2_b,bo
                        lnf_ref,                    # (8, D) f32: lnf_g,lnf_b
                        proj_ref,                   # (D, E) bf16
                        o_ref,                      # (8, E) f32 (row 0 = result)
                        x_res):                     # VMEM scratch (L, D) f32
    b = pl.program_id(0)
    l = pl.program_id(1)

    # ---- first layer of this prompt: build the residual stream in VMEM.
    @pl.when(l == 0)
    def _():
        x_res[...] = (x_in_ref[...].astype(jnp.float32)
                      + pos_ref[...].astype(jnp.float32))

    x = x_res[...]                                  # (L, D) f32 residual

    # Causal-mask predicate, applied with a select on the (L, L) score tile.
    row = jax.lax.broadcasted_iota(jnp.int32, (L, L), 0)
    col = jax.lax.broadcasted_iota(jnp.int32, (L, L), 1)
    keep = col <= row
    scale = 1.0 / math.sqrt(HD)

    # ---------------- attention: x <- x + out_proj(MHA(ln_1(x))) -----------
    xn = _layernorm(x, vec_ref[0:1, :], vec_ref[1:2, :]).astype(jnp.bfloat16)

    attn = jnp.zeros((L, D), jnp.float32)
    for h in range(H):                              # head axis = leading ref index
        wq = wqkv_ref[0 * H + h]                    # (D+8, HD): rows [:D]=W, [D]=bias
        wk = wqkv_ref[1 * H + h]
        wv = wqkv_ref[2 * H + h]
        q = jnp.dot(xn, wq[:D, :], preferred_element_type=jnp.float32) \
            + wq[D:D + 1, :].astype(jnp.float32)
        k = jnp.dot(xn, wk[:D, :], preferred_element_type=jnp.float32) \
            + wk[D:D + 1, :].astype(jnp.float32)
        v = jnp.dot(xn, wv[:D, :], preferred_element_type=jnp.float32) \
            + wv[D:D + 1, :].astype(jnp.float32)

        q_bf = (q * scale).astype(jnp.bfloat16)
        # q @ k^T without materializing the transpose.
        s = jax.lax.dot_general(q_bf, k.astype(jnp.bfloat16),
                                (((1,), (1,)), ((), ())),
                                preferred_element_type=jnp.float32)   # (L, L)
        s = jnp.where(keep, s, NEG)
        s = s - jnp.max(s, axis=-1, keepdims=True)
        p = jnp.exp(s)
        p = p / jnp.sum(p, axis=-1, keepdims=True)  # exact normalization (f32)
        o_h = jnp.dot(p.astype(jnp.bfloat16), v.astype(jnp.bfloat16),
                      preferred_element_type=jnp.float32)             # (L, HD)
        # fold the per-head concat straight into the out-projection
        attn = attn + jnp.dot(o_h.astype(jnp.bfloat16), wo_ref[h],
                              preferred_element_type=jnp.float32)     # (L, D)
    x = x + attn + vec_ref[4:5, :]                  # + out_proj bias

    # ---------------- MLP: x <- x + c_proj(QuickGELU(c_fc(ln_2(x)))) -------
    xn = _layernorm(x, vec_ref[2:3, :], vec_ref[3:4, :]).astype(jnp.bfloat16)
    h1 = jnp.dot(xn, w1_ref[:D, :], preferred_element_type=jnp.float32) \
         + w1_ref[D:D + 1, :].astype(jnp.float32)
    h1 = h1 * jax.nn.sigmoid(1.702 * h1)            # CLIP QuickGELU (f32)
    x = x + jnp.dot(h1.astype(jnp.bfloat16), w2_ref[:FF, :],
                    preferred_element_type=jnp.float32) \
          + w2_ref[FF:FF + 1, :].astype(jnp.float32)

    x_res[...] = x                                  # carry residual to next layer

    # -------- last layer: ln_final + EOT gather (one-hot matmul) + proj ----
    @pl.when(l == N_LAYERS - 1)
    def _():
        sel = (jax.lax.broadcasted_iota(jnp.int32, (1, L), 1)
               == eot_ref[b]).astype(jnp.float32)
        eot_row = jnp.dot(sel, x, preferred_element_type=jnp.float32)  # (1, D)
        rn = _layernorm(eot_row, lnf_ref[0:1, :], lnf_ref[1:2, :])
        res = jnp.dot(rn.astype(jnp.bfloat16), proj_ref[...],
                      preferred_element_type=jnp.float32)              # (1, E)
        o_ref[...] = jnp.broadcast_to(res, (8, E))


# ---------------------------------------------------------------------------
# Wrapper: single pallas_call, grid (batch, layer), batch parallel.
# ---------------------------------------------------------------------------
def text_encoder(prompts, tokenized_prompts, p):
    """Pallas equivalent of TextEncoder.forward(prompts, tokenized_prompts)."""
    eot = jnp.argmax(tokenized_prompts, axis=-1).astype(jnp.int32)

    grid_spec = pltpu.PrefetchScalarGridSpec(
        num_scalar_prefetch=1,
        grid=(B, N_LAYERS),                          # batch parallel, layers streamed
        in_specs=[
            pl.BlockSpec((None, L, D), lambda b, l, e: (b, 0, 0)),          # prompts
            pl.BlockSpec((L, D), lambda b, l, e: (0, 0)),                   # pos emb
            pl.BlockSpec((None, 3 * H, D + 8, HD), lambda b, l, e: (l, 0, 0, 0)),
            pl.BlockSpec((None, H, HD, D), lambda b, l, e: (l, 0, 0, 0)),
            pl.BlockSpec((None, D + 8, FF), lambda b, l, e: (l, 0, 0)),
            pl.BlockSpec((None, FF + 8, D), lambda b, l, e: (l, 0, 0)),
            pl.BlockSpec((None, 8, D), lambda b, l, e: (l, 0, 0)),          # ln/bias slab
            pl.BlockSpec((8, D), lambda b, l, e: (0, 0)),                   # ln_final slab
            pl.BlockSpec((D, E), lambda b, l, e: (0, 0)),                   # text_projection
        ],
        out_specs=pl.BlockSpec((None, 8, E), lambda b, l, e: (b, 0, 0)),
        scratch_shapes=[pltpu.VMEM((L, D), jnp.float32)],                   # residual
    )
    out = pl.pallas_call(
        text_encoder_kernel,
        grid_spec=grid_spec,
        out_shape=jax.ShapeDtypeStruct((B, 8, E), jnp.float32),
        compiler_params=pltpu.CompilerParams(
            dimension_semantics=("parallel", "arbitrary"),
            vmem_limit_bytes=32 * 1024 * 1024),
    )(eot, prompts.astype(jnp.bfloat16), p["pos"], p["wqkv"], p["wo"],
      p["w1"], p["w2"], p["vec"], p["lnf"], p["proj"])
    return out[:, 0, :]                              # sublane-padded rows -> (B, E)


# ---------------------------------------------------------------------------
# Deterministic synthetic parameters.
# PyTorch nn.Linear layout is (out, in); weights are pre-transposed ONCE,
# pre-split per head where needed, bias rows are appended to the weight slabs,
# and matmul weights are cast to bf16 (the reference uses the bf16-rounded
# values so kernel vs reference only differ by activation rounding).
# ---------------------------------------------------------------------------
def init_params(key):
    ks = iter(jax.random.split(key, 64))

    def nrm(shape, scale=0.02):
        return scale * jax.random.normal(next(ks), shape, jnp.float32)

    def rnd(a):  # round-trip through bf16, return float32 numpy
        return np.asarray(jnp.asarray(a, jnp.bfloat16).astype(jnp.float32))

    wqkv_l, wo_l, w1_l, w2_l, vec_l = [], [], [], [], []
    r = {k: [] for k in ("wqkv_t", "bqkv", "wo_t", "bo", "w1_t", "b1",
                         "w2_t", "b2", "ln1_g", "ln1_b", "ln2_g", "ln2_b")}

    for _ in range(N_LAYERS):
        w_in = rnd(nrm((3 * D, D)))          # attn.in_proj_weight (out, in)
        b_in = rnd(nrm((3 * D,)))            # attn.in_proj_bias
        w_out = rnd(nrm((D, D)))             # attn.out_proj.weight
        b_out = np.asarray(nrm((D,)))        # attn.out_proj.bias (f32 slab)
        w_fc = rnd(nrm((FF, D)))             # mlp.c_fc.weight
        b_fc = rnd(nrm((FF,)))
        w_pr = rnd(nrm((D, FF)))             # mlp.c_proj.weight
        b_pr = rnd(nrm((D,)))
        ln1g = np.asarray(1.0 + nrm((D,), 0.05)); ln1b = np.asarray(nrm((D,), 0.05))
        ln2g = np.asarray(1.0 + nrm((D,), 0.05)); ln2b = np.asarray(nrm((D,), 0.05))

        w_in_t = w_in.T                      # (D, 3D), columns = [q | k | v], head-major
        qkv_aug = np.zeros((3 * H, D + 8, HD), np.float32)
        for i3 in range(3):
            for h in range(H):
                cols = slice(i3 * D + h * HD, i3 * D + (h + 1) * HD)
                qkv_aug[i3 * H + h, :D, :] = w_in_t[:, cols]
                qkv_aug[i3 * H + h, D, :] = b_in[cols]
        wqkv_l.append(qkv_aug)
        wo_l.append(w_out.T.reshape(H, HD, D))           # per-head out-proj rows

        w1a = np.zeros((D + 8, FF), np.float32); w1a[:D] = w_fc.T; w1a[D] = b_fc
        w1_l.append(w1a)
        w2a = np.zeros((FF + 8, D), np.float32); w2a[:FF] = w_pr.T; w2a[FF] = b_pr
        w2_l.append(w2a)
        vec = np.zeros((8, D), np.float32)
        vec[0], vec[1], vec[2], vec[3], vec[4] = ln1g, ln1b, ln2g, ln2b, b_out
        vec_l.append(vec)

        r["wqkv_t"].append(w_in_t); r["bqkv"].append(b_in)
        r["wo_t"].append(w_out.T);  r["bo"].append(b_out)
        r["w1_t"].append(w_fc.T);   r["b1"].append(b_fc)
        r["w2_t"].append(w_pr.T);   r["b2"].append(b_pr)
        r["ln1_g"].append(ln1g);    r["ln1_b"].append(ln1b)
        r["ln2_g"].append(ln2g);    r["ln2_b"].append(ln2b)

    pos = rnd(nrm((L, D), 0.01))                         # positional_embedding
    lnfg = np.asarray(1.0 + nrm((D,), 0.05)); lnfb = np.asarray(nrm((D,), 0.05))
    lnf = np.zeros((8, D), np.float32); lnf[0] = lnfg; lnf[1] = lnfb
    proj = rnd(nrm((D, E)))                              # text_projection

    kernel_params = dict(
        pos=jnp.asarray(pos, jnp.bfloat16),
        wqkv=jnp.asarray(np.stack(wqkv_l), jnp.bfloat16),
        wo=jnp.asarray(np.stack(wo_l), jnp.bfloat16),
        w1=jnp.asarray(np.stack(w1_l), jnp.bfloat16),
        w2=jnp.asarray(np.stack(w2_l), jnp.bfloat16),
        vec=jnp.asarray(np.stack(vec_l), jnp.float32),
        lnf=jnp.asarray(lnf, jnp.float32),
        proj=jnp.asarray(proj, jnp.bfloat16),
    )
    ref_params = {k: jnp.asarray(np.stack(v)) for k, v in r.items()}
    ref_params.update(pos=jnp.asarray(pos), lnf_g=jnp.asarray(lnfg),
                      lnf_b=jnp.asarray(lnfb), proj=jnp.asarray(proj))
    return kernel_params, ref_params


# ---------------------------------------------------------------------------
# Pure-JAX reference (mirrors the PyTorch forward exactly, f32 math)
# ---------------------------------------------------------------------------
def reference_text_encoder(prompts, tokenized_prompts, rp):
    def ln(x, g, b):
        mu = x.mean(-1, keepdims=True)
        var = ((x - mu) ** 2).mean(-1, keepdims=True)
        return (x - mu) / jnp.sqrt(var + LN_EPS) * g + b

    mask = jnp.triu(jnp.full((L, L), -jnp.inf, jnp.float32), k=1)
    x = prompts + rp["pos"]
    for l in range(N_LAYERS):
        xn = ln(x, rp["ln1_g"][l], rp["ln1_b"][l])
        qkv = xn @ rp["wqkv_t"][l] + rp["bqkv"][l]
        q, k, v = jnp.split(qkv, 3, axis=-1)
        q = q.reshape(B, L, H, HD)
        k = k.reshape(B, L, H, HD)
        v = v.reshape(B, L, H, HD)
        s = jnp.einsum("blhd,bmhd->bhlm", q, k) / math.sqrt(HD) + mask
        a = jax.nn.softmax(s, axis=-1)
        o = jnp.einsum("bhlm,bmhd->blhd", a, v).reshape(B, L, D)
        x = x + o @ rp["wo_t"][l] + rp["bo"][l]
        xn = ln(x, rp["ln2_g"][l], rp["ln2_b"][l])
        h2 = xn @ rp["w1_t"][l] + rp["b1"][l]
        h2 = h2 * jax.nn.sigmoid(1.702 * h2)
        x = x + h2 @ rp["w2_t"][l] + rp["b2"][l]
    xn = ln(x, rp["lnf_g"], rp["lnf_b"])
    eot = jnp.argmax(tokenized_prompts, axis=-1)
    return xn[jnp.arange(B), eot] @ rp["proj"]


# ---------------------------------------------------------------------------
if __name__ == "__main__":
    key = jax.random.PRNGKey(0)
    k_par, k_prompt, k_tok = jax.random.split(key, 3)

    kernel_params, ref_params = init_params(k_par)
    prompts = 0.1 * jax.random.normal(k_prompt, (B, L, D), jnp.float32)
    prompts = prompts.astype(jnp.bfloat16).astype(jnp.float32)  # bf16-representable
    # synthetic tokenized prompts: EOT token id (49407) is the argmax per row
    tokenized = jax.random.randint(k_tok, (B, L), 1, 100, dtype=jnp.int32)
    eot_pos = jnp.array([5, 7], dtype=jnp.int32)
    tokenized = tokenized.at[jnp.arange(B), eot_pos].set(49407)

    out = text_encoder(prompts, tokenized, kernel_params)
    out = jax.block_until_ready(out)

    ref = reference_text_encoder(prompts, tokenized, ref_params)
    assert out.shape == (B, E)
    np.testing.assert_allclose(np.asarray(out), np.asarray(ref),
                               rtol=2e-2, atol=2e-2)
    print("KERNEL_OK")
</pallas_src>

<mosaic_0001>
module attributes {stable_mosaic.version = 11 : i64} {
  func.func @text_encoder_kernel(%arg0: i32, %arg1: i32, %arg2: memref<2xi32, #tpu.memory_space<smem>>, %arg3: memref<1x8x32xbf16, #tpu.memory_space<vmem>>, %arg4: memref<8x32xbf16, #tpu.memory_space<vmem>>, %arg5: memref<1x12x40x8xbf16, #tpu.memory_space<vmem>>, %arg6: memref<1x4x8x32xbf16, #tpu.memory_space<vmem>>, %arg7: memref<1x40x128xbf16, #tpu.memory_space<vmem>>, %arg8: memref<1x136x32xbf16, #tpu.memory_space<vmem>>, %arg9: memref<1x8x32xf32, #tpu.memory_space<vmem>>, %arg10: memref<8x32xf32, #tpu.memory_space<vmem>>, %arg11: memref<32x32xbf16, #tpu.memory_space<vmem>>, %arg12: memref<1x8x32xf32, #tpu.memory_space<vmem>>, %arg13: memref<8x32xf32, #tpu.memory_space<vmem>>) attributes {dimension_semantics = [#tpu.dimension_semantics<parallel>, #tpu.dimension_semantics<arbitrary>], iteration_bounds = array<i64: 2, 2>, scalar_prefetch = 1 : i64, scratch_operands = 1 : i64, tpu.core_type = #tpu.core_type<tc>, window_params = [{transform_indices = @transform_0, window_bounds = array<i64: 1, 8, 32>}, {pipeline_mode = #tpu.pipeline_mode<synchronous>, transform_indices = @transform_1, window_bounds = array<i64: 8, 32>}, {transform_indices = @transform_2, window_bounds = array<i64: 1, 12, 40, 8>}, {transform_indices = @transform_3, window_bounds = array<i64: 1, 4, 8, 32>}, {transform_indices = @transform_4, window_bounds = array<i64: 1, 40, 128>}, {transform_indices = @transform_5, window_bounds = array<i64: 1, 136, 32>}, {transform_indices = @transform_6, window_bounds = array<i64: 1, 8, 32>}, {pipeline_mode = #tpu.pipeline_mode<synchronous>, transform_indices = @transform_7, window_bounds = array<i64: 8, 32>}, {pipeline_mode = #tpu.pipeline_mode<synchronous>, transform_indices = @transform_8, window_bounds = array<i64: 32, 32>}, {transform_indices = @transform_9, window_bounds = array<i64: 1, 8, 32>}]} {
    %c0_i32 = arith.constant 0 : i32
    %0 = arith.cmpi eq, %arg1, %c0_i32 : i32
    %1 = arith.extui %0 : i1 to i32
    %c0_i32_0 = arith.constant 0 : i32
    %2 = arith.cmpi ne, %1, %c0_i32_0 : i32
    scf.if %2 {
      %c0_137 = arith.constant 0 : index
      %c0_138 = arith.constant 0 : index
      %c0_139 = arith.constant 0 : index
      %289 = vector.load %arg3[%c0_137, %c0_138, %c0_139] : memref<1x8x32xbf16, #tpu.memory_space<vmem>>, vector<1x8x32xbf16>
      %290 = vector.shape_cast %289 : vector<1x8x32xbf16> to vector<8x32xbf16>
      %291 = arith.extf %290 : vector<8x32xbf16> to vector<8x32xf32>
      %c0_140 = arith.constant 0 : index
      %c0_141 = arith.constant 0 : index
      %292 = vector.load %arg4[%c0_140, %c0_141] : memref<8x32xbf16, #tpu.memory_space<vmem>>, vector<8x32xbf16>
      %293 = arith.extf %292 : vector<8x32xbf16> to vector<8x32xf32>
      %294 = arith.addf %291, %293 : vector<8x32xf32>
      %c0_142 = arith.constant 0 : index
      %c0_143 = arith.constant 0 : index
      %295 = vector.load %arg13[%c0_142, %c0_143] : memref<8x32xf32, #tpu.memory_space<vmem>>, vector<8x32xf32>
      tpu.vector_store %arg13[%c0_142, %c0_143], %294 {strides = array<i32>} : memref<8x32xf32, #tpu.memory_space<vmem>>, vector<8x32xf32>,
    } else {
    }
    %c0 = arith.constant 0 : index
    %c0_1 = arith.constant 0 : index
    %3 = vector.load %arg13[%c0, %c0_1] : memref<8x32xf32, #tpu.memory_space<vmem>>, vector<8x32xf32>
    %4 = tpu.iota {dimensions = array<i32: 0>} : vector<8x8xi32>
    %5 = tpu.iota {dimensions = array<i32: 1>} : vector<8x8xi32>
    %6 = arith.cmpi sle, %5, %4 : vector<8x8xi32>
    %c0_2 = arith.constant 0 : index
    %c0_3 = arith.constant 0 : index
    %c0_4 = arith.constant 0 : index
    %7 = vector.load %arg9[%c0_2, %c0_3, %c0_4] : memref<1x8x32xf32, #tpu.memory_space<vmem>>, vector<1x1x32xf32>
    %8 = vector.shape_cast %7 : vector<1x1x32xf32> to vector<1x32xf32>
    %c0_5 = arith.constant 0 : index
    %c1 = arith.constant 1 : index
    %c0_6 = arith.constant 0 : index
    %9 = vector.load %arg9[%c0_5, %c1, %c0_6] : memref<1x8x32xf32, #tpu.memory_space<vmem>>, vector<1x1x32xf32>
    %10 = vector.shape_cast %9 : vector<1x1x32xf32> to vector<1x32xf32>
    %cst = arith.constant dense<0.000000e+00> : vector<8xf32>
    %11 = vector.multi_reduction <add>, %3, %cst [1] : vector<8x32xf32> to vector<8xf32>
    %12 = vector.shape_cast %11 : vector<8xf32> to vector<8x1xf32>
    %cst_7 = arith.constant 3.200000e+01 : f32
    %13 = vector.broadcast %cst_7 : f32 to vector<8x1xf32>
    %14 = arith.divf %12, %13 : vector<8x1xf32>
    %15 = vector.broadcast %14 : vector<8x1xf32> to vector<8x32xf32>
    %16 = arith.subf %3, %15 : vector<8x32xf32>
    %17 = arith.mulf %16, %16 : vector<8x32xf32>
    %cst_8 = arith.constant dense<0.000000e+00> : vector<8xf32>
    %18 = vector.multi_reduction <add>, %17, %cst_8 [1] : vector<8x32xf32> to vector<8xf32>
    %19 = vector.shape_cast %18 : vector<8xf32> to vector<8x1xf32>
    %cst_9 = arith.constant 3.200000e+01 : f32
    %20 = vector.broadcast %cst_9 : f32 to vector<8x1xf32>
    %21 = arith.divf %19, %20 : vector<8x1xf32>
    %22 = vector.broadcast %14 : vector<8x1xf32> to vector<8x32xf32>
    %23 = arith.subf %3, %22 : vector<8x32xf32>
    %cst_10 = arith.constant 9.99999974E-6 : f32
    %24 = vector.broadcast %cst_10 : f32 to vector<8x1xf32>
    %25 = arith.addf %21, %24 : vector<8x1xf32>
    %26 = math.rsqrt %25 : vector<8x1xf32>
    %27 = vector.broadcast %26 : vector<8x1xf32> to vector<8x32xf32>
    %28 = arith.mulf %23, %27 : vector<8x32xf32>
    %29 = vector.broadcast %8 : vector<1x32xf32> to vector<8x32xf32>
    %30 = arith.mulf %28, %29 : vector<8x32xf32>
    %31 = vector.broadcast %10 : vector<1x32xf32> to vector<8x32xf32>
    %32 = arith.addf %30, %31 : vector<8x32xf32>
    %33 = arith.truncf %32 : vector<8x32xf32> to vector<8x32xbf16>
    %cst_11 = arith.constant 0.000000e+00 : f32
    %34 = vector.broadcast %cst_11 : f32 to vector<8x32xf32>
    %c0_12 = arith.constant 0 : index
    %c0_13 = arith.constant 0 : index
    %c0_14 = arith.constant 0 : index
    %c0_15 = arith.constant 0 : index
    %35 = vector.load %arg5[%c0_12, %c0_13, %c0_14, %c0_15] : memref<1x12x40x8xbf16, #tpu.memory_space<vmem>>, vector<1x1x40x8xbf16>
    %36 = vector.shape_cast %35 : vector<1x1x40x8xbf16> to vector<40x8xbf16>
    %c0_16 = arith.constant 0 : index
    %c4 = arith.constant 4 : index
    %c0_17 = arith.constant 0 : index
    %c0_18 = arith.constant 0 : index
    %37 = vector.load %arg5[%c0_16, %c4, %c0_17, %c0_18] : memref<1x12x40x8xbf16, #tpu.memory_space<vmem>>, vector<1x1x40x8xbf16>
    %38 = vector.shape_cast %37 : vector<1x1x40x8xbf16> to vector<40x8xbf16>
    %c0_19 = arith.constant 0 : index
    %c8 = arith.constant 8 : index
    %c0_20 = arith.constant 0 : index
    %c0_21 = arith.constant 0 : index
    %39 = vector.load %arg5[%c0_19, %c8, %c0_20, %c0_21] : memref<1x12x40x8xbf16, #tpu.memory_space<vmem>>, vector<1x1x40x8xbf16>
    %40 = vector.shape_cast %39 : vector<1x1x40x8xbf16> to vector<40x8xbf16>
    %41 = vector.extract_strided_slice %36 {offsets = [0, 0], sizes = [32, 8], strides = [1, 1]} : vector<40x8xbf16> to vector<32x8xbf16>
    %cst_22 = arith.constant dense<0.000000e+00> : vector<8x8xf32>
    %42 = tpu.matmul %33, %41, %cst_22 {dimension_numbers = #tpu.dot_dimension_numbers<[1], [0], [0], [1], [0, 0, 1, 1], [], []>} : vector<8x32xbf16>, vector<32x8xbf16>, vector<8x8xf32> -> vector<8x8xf32>
    %43 = vector.extract_strided_slice %36 {offsets = [32, 0], sizes = [1, 8], strides = [1, 1]} : vector<40x8xbf16> to vector<1x8xbf16>
    %44 = arith.extf %43 : vector<1x8xbf16> to vector<1x8xf32>
    %45 = vector.broadcast %44 : vector<1x8xf32> to vector<8x8xf32>
    %46 = arith.addf %42, %45 : vector<8x8xf32>
    %47 = vector.extract_strided_slice %38 {offsets = [0, 0], sizes = [32, 8], strides = [1, 1]} : vector<40x8xbf16> to vector<32x8xbf16>
    %cst_23 = arith.constant dense<0.000000e+00> : vector<8x8xf32>
    %48 = tpu.matmul %33, %47, %cst_23 {dimension_numbers = #tpu.dot_dimension_numbers<[1], [0], [0], [1], [0, 0, 1, 1], [], []>} : vector<8x32xbf16>, vector<32x8xbf16>, vector<8x8xf32> -> vector<8x8xf32>
    %49 = vector.extract_strided_slice %38 {offsets = [32, 0], sizes = [1, 8], strides = [1, 1]} : vector<40x8xbf16> to vector<1x8xbf16>
    %50 = arith.extf %49 : vector<1x8xbf16> to vector<1x8xf32>
    %51 = vector.broadcast %50 : vector<1x8xf32> to vector<8x8xf32>
    %52 = arith.addf %48, %51 : vector<8x8xf32>
    %53 = vector.extract_strided_slice %40 {offsets = [0, 0], sizes = [32, 8], strides = [1, 1]} : vector<40x8xbf16> to vector<32x8xbf16>
    %cst_24 = arith.constant dense<0.000000e+00> : vector<8x8xf32>
    %54 = tpu.matmul %33, %53, %cst_24 {dimension_numbers = #tpu.dot_dimension_numbers<[1], [0], [0], [1], [0, 0, 1, 1], [], []>} : vector<8x32xbf16>, vector<32x8xbf16>, vector<8x8xf32> -> vector<8x8xf32>
    %55 = vector.extract_strided_slice %40 {offsets = [32, 0], sizes = [1, 8], strides = [1, 1]} : vector<40x8xbf16> to vector<1x8xbf16>
    %56 = arith.extf %55 : vector<1x8xbf16> to vector<1x8xf32>
    %57 = vector.broadcast %56 : vector<1x8xf32> to vector<8x8xf32>
    %58 = arith.addf %54, %57 : vector<8x8xf32>
    %cst_25 = arith.constant 0.353553385 : f32
    %59 = vector.broadcast %cst_25 : f32 to vector<8x8xf32>
    %60 = arith.mulf %46, %59 : vector<8x8xf32>
    %61 = arith.truncf %60 : vector<8x8xf32> to vector<8x8xbf16>
    %62 = arith.truncf %52 : vector<8x8xf32> to vector<8x8xbf16>
    %cst_26 = arith.constant dense<0.000000e+00> : vector<8x8xf32>
    %63 = tpu.matmul %61, %62, %cst_26 {dimension_numbers = #tpu.dot_dimension_numbers<[1], [1], [0], [0], [0, 0, 1, 0], [], []>} : vector<8x8xbf16>, vector<8x8xbf16>, vector<8x8xf32> -> vector<8x8xf32>
    %cst_27 = arith.constant -1.000000e+09 : f32
    %64 = vector.broadcast %cst_27 : f32 to vector<8x8xf32>
    %65 = arith.select %6, %63, %64 : vector<8x8xi1>, vector<8x8xf32>
    %cst_28 = arith.constant dense<0xFF800000> : vector<8xf32>
    %66 = vector.multi_reduction <maximumf>, %65, %cst_28 [1] : vector<8x8xf32> to vector<8xf32>
    %67 = vector.shape_cast %66 : vector<8xf32> to vector<8x1xf32>
    %68 = vector.broadcast %67 : vector<8x1xf32> to vector<8x8xf32>
    %69 = arith.subf %65, %68 : vector<8x8xf32>
    %70 = math.exp %69 : vector<8x8xf32>
    %cst_29 = arith.constant dense<0.000000e+00> : vector<8xf32>
    %71 = vector.multi_reduction <add>, %70, %cst_29 [1] : vector<8x8xf32> to vector<8xf32>
    %72 = vector.shape_cast %71 : vector<8xf32> to vector<8x1xf32>
    %73 = vector.broadcast %72 : vector<8x1xf32> to vector<8x8xf32>
    %74 = arith.divf %70, %73 : vector<8x8xf32>
    %75 = arith.truncf %74 : vector<8x8xf32> to vector<8x8xbf16>
    %76 = arith.truncf %58 : vector<8x8xf32> to vector<8x8xbf16>
    %cst_30 = arith.constant dense<0.000000e+00> : vector<8x8xf32>
    %77 = tpu.matmul %75, %76, %cst_30 {dimension_numbers = #tpu.dot_dimension_numbers<[1], [0], [0], [1], [0, 0, 1, 1], [], []>} : vector<8x8xbf16>, vector<8x8xbf16>, vector<8x8xf32> -> vector<8x8xf32>
    %78 = arith.truncf %77 : vector<8x8xf32> to vector<8x8xbf16>
    %c0_31 = arith.constant 0 : index
    %c0_32 = arith.constant 0 : index
    %c0_33 = arith.constant 0 : index
    %c0_34 = arith.constant 0 : index
    %79 = vector.load %arg6[%c0_31, %c0_32, %c0_33, %c0_34] : memref<1x4x8x32xbf16, #tpu.memory_space<vmem>>, vector<1x1x8x32xbf16>
    %80 = vector.shape_cast %79 : vector<1x1x8x32xbf16> to vector<8x32xbf16>
    %cst_35 = arith.constant dense<0.000000e+00> : vector<8x32xf32>
    %81 = tpu.matmul %78, %80, %cst_35 {dimension_numbers = #tpu.dot_dimension_numbers<[1], [0], [0], [1], [0, 0, 1, 1], [], []>} : vector<8x8xbf16>, vector<8x32xbf16>, vector<8x32xf32> -> vector<8x32xf32>
    %82 = arith.addf %34, %81 : vector<8x32xf32>
    %c0_36 = arith.constant 0 : index
    %c1_37 = arith.constant 1 : index
    %c0_38 = arith.constant 0 : index
    %c0_39 = arith.constant 0 : index
    %83 = vector.load %arg5[%c0_36, %c1_37, %c0_38, %c0_39] : memref<1x12x40x8xbf16, #tpu.memory_space<vmem>>, vector<1x1x40x8xbf16>
    %84 = vector.shape_cast %83 : vector<1x1x40x8xbf16> to vector<40x8xbf16>
    %c0_40 = arith.constant 0 : index
    %c5 = arith.constant 5 : index
    %c0_41 = arith.constant 0 : index
    %c0_42 = arith.constant 0 : index
    %85 = vector.load %arg5[%c0_40, %c5, %c0_41, %c0_42] : memref<1x12x40x8xbf16, #tpu.memory_space<vmem>>, vector<1x1x40x8xbf16>
    %86 = vector.shape_cast %85 : vector<1x1x40x8xbf16> to vector<40x8xbf16>
    %c0_43 = arith.constant 0 : index
    %c9 = arith.constant 9 : index
    %c0_44 = arith.constant 0 : index
    %c0_45 = arith.constant 0 : index
    %87 = vector.load %arg5[%c0_43, %c9, %c0_44, %c0_45] : memref<1x12x40x8xbf16, #tpu.memory_space<vmem>>, vector<1x1x40x8xbf16>
    %88 = vector.shape_cast %87 : vector<1x1x40x8xbf16> to vector<40x8xbf16>
    %89 = vector.extract_strided_slice %84 {offsets = [0, 0], sizes = [32, 8], strides = [1, 1]} : vector<40x8xbf16> to vector<32x8xbf16>
    %cst_46 = arith.constant dense<0.000000e+00> : vector<8x8xf32>
    %90 = tpu.matmul %33, %89, %cst_46 {dimension_numbers = #tpu.dot_dimension_numbers<[1], [0], [0], [1], [0, 0, 1, 1], [], []>} : vector<8x32xbf16>, vector<32x8xbf16>, vector<8x8xf32> -> vector<8x8xf32>
    %91 = vector.extract_strided_slice %84 {offsets = [32, 0], sizes = [1, 8], strides = [1, 1]} : vector<40x8xbf16> to vector<1x8xbf16>
    %92 = arith.extf %91 : vector<1x8xbf16> to vector<1x8xf32>
    %93 = vector.broadcast %92 : vector<1x8xf32> to vector<8x8xf32>
    %94 = arith.addf %90, %93 : vector<8x8xf32>
    %95 = vector.extract_strided_slice %86 {offsets = [0, 0], sizes = [32, 8], strides = [1, 1]} : vector<40x8xbf16> to vector<32x8xbf16>
    %cst_47 = arith.constant dense<0.000000e+00> : vector<8x8xf32>
    %96 = tpu.matmul %33, %95, %cst_47 {dimension_numbers = #tpu.dot_dimension_numbers<[1], [0], [0], [1], [0, 0, 1, 1], [], []>} : vector<8x32xbf16>, vector<32x8xbf16>, vector<8x8xf32> -> vector<8x8xf32>
    %97 = vector.extract_strided_slice %86 {offsets = [32, 0], sizes = [1, 8], strides = [1, 1]} : vector<40x8xbf16> to vector<1x8xbf16>
    %98 = arith.extf %97 : vector<1x8xbf16> to vector<1x8xf32>
    %99 = vector.broadcast %98 : vector<1x8xf32> to vector<8x8xf32>
    %100 = arith.addf %96, %99 : vector<8x8xf32>
    %101 = vector.extract_strided_slice %88 {offsets = [0, 0], sizes = [32, 8], strides = [1, 1]} : vector<40x8xbf16> to vector<32x8xbf16>
    %cst_48 = arith.constant dense<0.000000e+00> : vector<8x8xf32>
    %102 = tpu.matmul %33, %101, %cst_48 {dimension_numbers = #tpu.dot_dimension_numbers<[1], [0], [0], [1], [0, 0, 1, 1], [], []>} : vector<8x32xbf16>, vector<32x8xbf16>, vector<8x8xf32> -> vector<8x8xf32>
    %103 = vector.extract_strided_slice %88 {offsets = [32, 0], sizes = [1, 8], strides = [1, 1]} : vector<40x8xbf16> to vector<1x8xbf16>
    %104 = arith.extf %103 : vector<1x8xbf16> to vector<1x8xf32>
    %105 = vector.broadcast %104 : vector<1x8xf32> to vector<8x8xf32>
    %106 = arith.addf %102, %105 : vector<8x8xf32>
    %cst_49 = arith.constant 0.353553385 : f32
    %107 = vector.broadcast %cst_49 : f32 to vector<8x8xf32>
    %108 = arith.mulf %94, %107 : vector<8x8xf32>
    %109 = arith.truncf %108 : vector<8x8xf32> to vector<8x8xbf16>
    %110 = arith.truncf %100 : vector<8x8xf32> to vector<8x8xbf16>
    %cst_50 = arith.constant dense<0.000000e+00> : vector<8x8xf32>
    %111 = tpu.matmul %109, %110, %cst_50 {dimension_numbers = #tpu.dot_dimension_numbers<[1], [1], [0], [0], [0, 0, 1, 0], [], []>} : vector<8x8xbf16>, vector<8x8xbf16>, vector<8x8xf32> -> vector<8x8xf32>
    %cst_51 = arith.constant -1.000000e+09 : f32
    %112 = vector.broadcast %cst_51 : f32 to vector<8x8xf32>
    %113 = arith.select %6, %111, %112 : vector<8x8xi1>, vector<8x8xf32>
    %cst_52 = arith.constant dense<0xFF800000> : vector<8xf32>
    %114 = vector.multi_reduction <maximumf>, %113, %cst_52 [1] : vector<8x8xf32> to vector<8xf32>
    %115 = vector.shape_cast %114 : vector<8xf32> to vector<8x1xf32>
    %116 = vector.broadcast %115 : vector<8x1xf32> to vector<8x8xf32>
    %117 = arith.subf %113, %116 : vector<8x8xf32>
    %118 = math.exp %117 : vector<8x8xf32>
    %cst_53 = arith.constant dense<0.000000e+00> : vector<8xf32>
    %119 = vector.multi_reduction <add>, %118, %cst_53 [1] : vector<8x8xf32> to vector<8xf32>
    %120 = vector.shape_cast %119 : vector<8xf32> to vector<8x1xf32>
    %121 = vector.broadcast %120 : vector<8x1xf32> to vector<8x8xf32>
    %122 = arith.divf %118, %121 : vector<8x8xf32>
    %123 = arith.truncf %122 : vector<8x8xf32> to vector<8x8xbf16>
    %124 = arith.truncf %106 : vector<8x8xf32> to vector<8x8xbf16>
    %cst_54 = arith.constant dense<0.000000e+00> : vector<8x8xf32>
    %125 = tpu.matmul %123, %124, %cst_54 {dimension_numbers = #tpu.dot_dimension_numbers<[1], [0], [0], [1], [0, 0, 1, 1], [], []>} : vector<8x8xbf16>, vector<8x8xbf16>, vector<8x8xf32> -> vector<8x8xf32>
    %126 = arith.truncf %125 : vector<8x8xf32> to vector<8x8xbf16>
    %c0_55 = arith.constant 0 : index
    %c1_56 = arith.constant 1 : index
    %c0_57 = arith.constant 0 : index
    %c0_58 = arith.constant 0 : index
    %127 = vector.load %arg6[%c0_55, %c1_56, %c0_57, %c0_58] : memref<1x4x8x32xbf16, #tpu.memory_space<vmem>>, vector<1x1x8x32xbf16>
    %128 = vector.shape_cast %127 : vector<1x1x8x32xbf16> to vector<8x32xbf16>
    %cst_59 = arith.constant dense<0.000000e+00> : vector<8x32xf32>
    %129 = tpu.matmul %126, %128, %cst_59 {dimension_numbers = #tpu.dot_dimension_numbers<[1], [0], [0], [1], [0, 0, 1, 1], [], []>} : vector<8x8xbf16>, vector<8x32xbf16>, vector<8x32xf32> -> vector<8x32xf32>
    %130 = arith.addf %82, %129 : vector<8x32xf32>
    %c0_60 = arith.constant 0 : index
    %c2 = arith.constant 2 : index
    %c0_61 = arith.constant 0 : index
    %c0_62 = arith.constant 0 : index
    %131 = vector.load %arg5[%c0_60, %c2, %c0_61, %c0_62] : memref<1x12x40x8xbf16, #tpu.memory_space<vmem>>, vector<1x1x40x8xbf16>
    %132 = vector.shape_cast %131 : vector<1x1x40x8xbf16> to vector<40x8xbf16>
    %c0_63 = arith.constant 0 : index
    %c6 = arith.constant 6 : index
    %c0_64 = arith.constant 0 : index
    %c0_65 = arith.constant 0 : index
    %133 = vector.load %arg5[%c0_63, %c6, %c0_64, %c0_65] : memref<1x12x40x8xbf16, #tpu.memory_space<vmem>>, vector<1x1x40x8xbf16>
    %134 = vector.shape_cast %133 : vector<1x1x40x8xbf16> to vector<40x8xbf16>
    %c0_66 = arith.constant 0 : index
    %c10 = arith.constant 10 : index
    %c0_67 = arith.constant 0 : index
    %c0_68 = arith.constant 0 : index
    %135 = vector.load %arg5[%c0_66, %c10, %c0_67, %c0_68] : memref<1x12x40x8xbf16, #tpu.memory_space<vmem>>, vector<1x1x40x8xbf16>
    %136 = vector.shape_cast %135 : vector<1x1x40x8xbf16> to vector<40x8xbf16>
    %137 = vector.extract_strided_slice %132 {offsets = [0, 0], sizes = [32, 8], strides = [1, 1]} : vector<40x8xbf16> to vector<32x8xbf16>
    %cst_69 = arith.constant dense<0.000000e+00> : vector<8x8xf32>
    %138 = tpu.matmul %33, %137, %cst_69 {dimension_numbers = #tpu.dot_dimension_numbers<[1], [0], [0], [1], [0, 0, 1, 1], [], []>} : vector<8x32xbf16>, vector<32x8xbf16>, vector<8x8xf32> -> vector<8x8xf32>
    %139 = vector.extract_strided_slice %132 {offsets = [32, 0], sizes = [1, 8], strides = [1, 1]} : vector<40x8xbf16> to vector<1x8xbf16>
    %140 = arith.extf %139 : vector<1x8xbf16> to vector<1x8xf32>
    %141 = vector.broadcast %140 : vector<1x8xf32> to vector<8x8xf32>
    %142 = arith.addf %138, %141 : vector<8x8xf32>
    %143 = vector.extract_strided_slice %134 {offsets = [0, 0], sizes = [32, 8], strides = [1, 1]} : vector<40x8xbf16> to vector<32x8xbf16>
    %cst_70 = arith.constant dense<0.000000e+00> : vector<8x8xf32>
    %144 = tpu.matmul %33, %143, %cst_70 {dimension_numbers = #tpu.dot_dimension_numbers<[1], [0], [0], [1], [0, 0, 1, 1], [], []>} : vector<8x32xbf16>, vector<32x8xbf16>, vector<8x8xf32> -> vector<8x8xf32>
    %145 = vector.extract_strided_slice %134 {offsets = [32, 0], sizes = [1, 8], strides = [1, 1]} : vector<40x8xbf16> to vector<1x8xbf16>
    %146 = arith.extf %145 : vector<1x8xbf16> to vector<1x8xf32>
    %147 = vector.broadcast %146 : vector<1x8xf32> to vector<8x8xf32>
    %148 = arith.addf %144, %147 : vector<8x8xf32>
    %149 = vector.extract_strided_slice %136 {offsets = [0, 0], sizes = [32, 8], strides = [1, 1]} : vector<40x8xbf16> to vector<32x8xbf16>
    %cst_71 = arith.constant dense<0.000000e+00> : vector<8x8xf32>
    %150 = tpu.matmul %33, %149, %cst_71 {dimension_numbers = #tpu.dot_dimension_numbers<[1], [0], [0], [1], [0, 0, 1, 1], [], []>} : vector<8x32xbf16>, vector<32x8xbf16>, vector<8x8xf32> -> vector<8x8xf32>
    %151 = vector.extract_strided_slice %136 {offsets = [32, 0], sizes = [1, 8], strides = [1, 1]} : vector<40x8xbf16> to vector<1x8xbf16>
    %152 = arith.extf %151 : vector<1x8xbf16> to vector<1x8xf32>
    %153 = vector.broadcast %152 : vector<1x8xf32> to vector<8x8xf32>
    %154 = arith.addf %150, %153 : vector<8x8xf32>
    %cst_72 = arith.constant 0.353553385 : f32
    %155 = vector.broadcast %cst_72 : f32 to vector<8x8xf32>
    %156 = arith.mulf %142, %155 : vector<8x8xf32>
    %157 = arith.truncf %156 : vector<8x8xf32> to vector<8x8xbf16>
    %158 = arith.truncf %148 : vector<8x8xf32> to vector<8x8xbf16>
    %cst_73 = arith.constant dense<0.000000e+00> : vector<8x8xf32>
    %159 = tpu.matmul %157, %158, %cst_73 {dimension_numbers = #tpu.dot_dimension_numbers<[1], [1], [0], [0], [0, 0, 1, 0], [], []>} : vector<8x8xbf16>, vector<8x8xbf16>, vector<8x8xf32> -> vector<8x8xf32>
    %cst_74 = arith.constant -1.000000e+09 : f32
    %160 = vector.broadcast %cst_74 : f32 to vector<8x8xf32>
    %161 = arith.select %6, %159, %160 : vector<8x8xi1>, vector<8x8xf32>
    %cst_75 = arith.constant dense<0xFF800000> : vector<8xf32>
    %162 = vector.multi_reduction <maximumf>, %161, %cst_75 [1] : vector<8x8xf32> to vector<8xf32>
    %163 = vector.shape_cast %162 : vector<8xf32> to vector<8x1xf32>
    %164 = vector.broadcast %163 : vector<8x1xf32> to vector<8x8xf32>
    %165 = arith.subf %161, %164 : vector<8x8xf32>
    %166 = math.exp %165 : vector<8x8xf32>
    %cst_76 = arith.constant dense<0.000000e+00> : vector<8xf32>
    %167 = vector.multi_reduction <add>, %166, %cst_76 [1] : vector<8x8xf32> to vector<8xf32>
    %168 = vector.shape_cast %167 : vector<8xf32> to vector<8x1xf32>
    %169 = vector.broadcast %168 : vector<8x1xf32> to vector<8x8xf32>
    %170 = arith.divf %166, %169 : vector<8x8xf32>
    %171 = arith.truncf %170 : vector<8x8xf32> to vector<8x8xbf16>
    %172 = arith.truncf %154 : vector<8x8xf32> to vector<8x8xbf16>
    %cst_77 = arith.constant dense<0.000000e+00> : vector<8x8xf32>
    %173 = tpu.matmul %171, %172, %cst_77 {dimension_numbers = #tpu.dot_dimension_numbers<[1], [0], [0], [1], [0, 0, 1, 1], [], []>} : vector<8x8xbf16>, vector<8x8xbf16>, vector<8x8xf32> -> vector<8x8xf32>
    %174 = arith.truncf %173 : vector<8x8xf32> to vector<8x8xbf16>
    %c0_78 = arith.constant 0 : index
    %c2_79 = arith.constant 2 : index
    %c0_80 = arith.constant 0 : index
    %c0_81 = arith.constant 0 : index
    %175 = vector.load %arg6[%c0_78, %c2_79, %c0_80, %c0_81] : memref<1x4x8x32xbf16, #tpu.memory_space<vmem>>, vector<1x1x8x32xbf16>
    %176 = vector.shape_cast %175 : vector<1x1x8x32xbf16> to vector<8x32xbf16>
    %cst_82 = arith.constant dense<0.000000e+00> : vector<8x32xf32>
    %177 = tpu.matmul %174, %176, %cst_82 {dimension_numbers = #tpu.dot_dimension_numbers<[1], [0], [0], [1], [0, 0, 1, 1], [], []>} : vector<8x8xbf16>, vector<8x32xbf16>, vector<8x32xf32> -> vector<8x32xf32>
    %178 = arith.addf %130, %177 : vector<8x32xf32>
    %c0_83 = arith.constant 0 : index
    %c3 = arith.constant 3 : index
    %c0_84 = arith.constant 0 : index
    %c0_85 = arith.constant 0 : index
    %179 = vector.load %arg5[%c0_83, %c3, %c0_84, %c0_85] : memref<1x12x40x8xbf16, #tpu.memory_space<vmem>>, vector<1x1x40x8xbf16>
    %180 = vector.shape_cast %179 : vector<1x1x40x8xbf16> to vector<40x8xbf16>
    %c0_86 = arith.constant 0 : index
    %c7 = arith.constant 7 : index
    %c0_87 = arith.constant 0 : index
    %c0_88 = arith.constant 0 : index
    %181 = vector.load %arg5[%c0_86, %c7, %c0_87, %c0_88] : memref<1x12x40x8xbf16, #tpu.memory_space<vmem>>, vector<1x1x40x8xbf16>
    %182 = vector.shape_cast %181 : vector<1x1x40x8xbf16> to vector<40x8xbf16>
    %c0_89 = arith.constant 0 : index
    %c11 = arith.constant 11 : index
    %c0_90 = arith.constant 0 : index
    %c0_91 = arith.constant 0 : index
    %183 = vector.load %arg5[%c0_89, %c11, %c0_90, %c0_91] : memref<1x12x40x8xbf16, #tpu.memory_space<vmem>>, vector<1x1x40x8xbf16>
    %184 = vector.shape_cast %183 : vector<1x1x40x8xbf16> to vector<40x8xbf16>
    %185 = vector.extract_strided_slice %180 {offsets = [0, 0], sizes = [32, 8], strides = [1, 1]} : vector<40x8xbf16> to vector<32x8xbf16>
    %cst_92 = arith.constant dense<0.000000e+00> : vector<8x8xf32>
    %186 = tpu.matmul %33, %185, %cst_92 {dimension_numbers = #tpu.dot_dimension_numbers<[1], [0], [0], [1], [0, 0, 1, 1], [], []>} : vector<8x32xbf16>, vector<32x8xbf16>, vector<8x8xf32> -> vector<8x8xf32>
    %187 = vector.extract_strided_slice %180 {offsets = [32, 0], sizes = [1, 8], strides = [1, 1]} : vector<40x8xbf16> to vector<1x8xbf16>
    %188 = arith.extf %187 : vector<1x8xbf16> to vector<1x8xf32>
    %189 = vector.broadcast %188 : vector<1x8xf32> to vector<8x8xf32>
    %190 = arith.addf %186, %189 : vector<8x8xf32>
    %191 = vector.extract_strided_slice %182 {offsets = [0, 0], sizes = [32, 8], strides = [1, 1]} : vector<40x8xbf16> to vector<32x8xbf16>
    %cst_93 = arith.constant dense<0.000000e+00> : vector<8x8xf32>
    %192 = tpu.matmul %33, %191, %cst_93 {dimension_numbers = #tpu.dot_dimension_numbers<[1], [0], [0], [1], [0, 0, 1, 1], [], []>} : vector<8x32xbf16>, vector<32x8xbf16>, vector<8x8xf32> -> vector<8x8xf32>
    %193 = vector.extract_strided_slice %182 {offsets = [32, 0], sizes = [1, 8], strides = [1, 1]} : vector<40x8xbf16> to vector<1x8xbf16>
    %194 = arith.extf %193 : vector<1x8xbf16> to vector<1x8xf32>
    %195 = vector.broadcast %194 : vector<1x8xf32> to vector<8x8xf32>
    %196 = arith.addf %192, %195 : vector<8x8xf32>
    %197 = vector.extract_strided_slice %184 {offsets = [0, 0], sizes = [32, 8], strides = [1, 1]} : vector<40x8xbf16> to vector<32x8xbf16>
    %cst_94 = arith.constant dense<0.000000e+00> : vector<8x8xf32>
    %198 = tpu.matmul %33, %197, %cst_94 {dimension_numbers = #tpu.dot_dimension_numbers<[1], [0], [0], [1], [0, 0, 1, 1], [], []>} : vector<8x32xbf16>, vector<32x8xbf16>, vector<8x8xf32> -> vector<8x8xf32>
    %199 = vector.extract_strided_slice %184 {offsets = [32, 0], sizes = [1, 8], strides = [1, 1]} : vector<40x8xbf16> to vector<1x8xbf16>
    %200 = arith.extf %199 : vector<1x8xbf16> to vector<1x8xf32>
    %201 = vector.broadcast %200 : vector<1x8xf32> to vector<8x8xf32>
    %202 = arith.addf %198, %201 : vector<8x8xf32>
    %cst_95 = arith.constant 0.353553385 : f32
    %203 = vector.broadcast %cst_95 : f32 to vector<8x8xf32>
    %204 = arith.mulf %190, %203 : vector<8x8xf32>
    %205 = arith.truncf %204 : vector<8x8xf32> to vector<8x8xbf16>
    %206 = arith.truncf %196 : vector<8x8xf32> to vector<8x8xbf16>
    %cst_96 = arith.constant dense<0.000000e+00> : vector<8x8xf32>
    %207 = tpu.matmul %205, %206, %cst_96 {dimension_numbers = #tpu.dot_dimension_numbers<[1], [1], [0], [0], [0, 0, 1, 0], [], []>} : vector<8x8xbf16>, vector<8x8xbf16>, vector<8x8xf32> -> vector<8x8xf32>
    %cst_97 = arith.constant -1.000000e+09 : f32
    %208 = vector.broadcast %cst_97 : f32 to vector<8x8xf32>
    %209 = arith.select %6, %207, %208 : vector<8x8xi1>, vector<8x8xf32>
    %cst_98 = arith.constant dense<0xFF800000> : vector<8xf32>
    %210 = vector.multi_reduction <maximumf>, %209, %cst_98 [1] : vector<8x8xf32> to vector<8xf32>
    %211 = vector.shape_cast %210 : vector<8xf32> to vector<8x1xf32>
    %212 = vector.broadcast %211 : vector<8x1xf32> to vector<8x8xf32>
    %213 = arith.subf %209, %212 : vector<8x8xf32>
    %214 = math.exp %213 : vector<8x8xf32>
    %cst_99 = arith.constant dense<0.000000e+00> : vector<8xf32>
    %215 = vector.multi_reduction <add>, %214, %cst_99 [1] : vector<8x8xf32> to vector<8xf32>
    %216 = vector.shape_cast %215 : vector<8xf32> to vector<8x1xf32>
    %217 = vector.broadcast %216 : vector<8x1xf32> to vector<8x8xf32>
    %218 = arith.divf %214, %217 : vector<8x8xf32>
    %219 = arith.truncf %218 : vector<8x8xf32> to vector<8x8xbf16>
    %220 = arith.truncf %202 : vector<8x8xf32> to vector<8x8xbf16>
    %cst_100 = arith.constant dense<0.000000e+00> : vector<8x8xf32>
    %221 = tpu.matmul %219, %220, %cst_100 {dimension_numbers = #tpu.dot_dimension_numbers<[1], [0], [0], [1], [0, 0, 1, 1], [], []>} : vector<8x8xbf16>, vector<8x8xbf16>, vector<8x8xf32> -> vector<8x8xf32>
    %222 = arith.truncf %221 : vector<8x8xf32> to vector<8x8xbf16>
    %c0_101 = arith.constant 0 : index
    %c3_102 = arith.constant 3 : index
    %c0_103 = arith.constant 0 : index
    %c0_104 = arith.constant 0 : index
    %223 = vector.load %arg6[%c0_101, %c3_102, %c0_103, %c0_104] : memref<1x4x8x32xbf16, #tpu.memory_space<vmem>>, vector<1x1x8x32xbf16>
    %224 = vector.shape_cast %223 : vector<1x1x8x32xbf16> to vector<8x32xbf16>
    %cst_105 = arith.constant dense<0.000000e+00> : vector<8x32xf32>
    %225 = tpu.matmul %222, %224, %cst_105 {dimension_numbers = #tpu.dot_dimension_numbers<[1], [0], [0], [1], [0, 0, 1, 1], [], []>} : vector<8x8xbf16>, vector<8x32xbf16>, vector<8x32xf32> -> vector<8x32xf32>
    %226 = arith.addf %178, %225 : vector<8x32xf32>
    %227 = arith.addf %3, %226 : vector<8x32xf32>
    %c0_106 = arith.constant 0 : index
    %c4_107 = arith.constant 4 : index
    %c0_108 = arith.constant 0 : index
    %228 = vector.load %arg9[%c0_106, %c4_107, %c0_108] : memref<1x8x32xf32, #tpu.memory_space<vmem>>, vector<1x1x32xf32>
    %229 = vector.shape_cast %228 : vector<1x1x32xf32> to vector<1x32xf32>
    %230 = vector.broadcast %229 : vector<1x32xf32> to vector<8x32xf32>
    %231 = arith.addf %227, %230 : vector<8x32xf32>
    %c0_109 = arith.constant 0 : index
    %c2_110 = arith.constant 2 : index
    %c0_111 = arith.constant 0 : index
    %232 = vector.load %arg9[%c0_109, %c2_110, %c0_111] : memref<1x8x32xf32, #tpu.memory_space<vmem>>, vector<1x1x32xf32>
    %233 = vector.shape_cast %232 : vector<1x1x32xf32> to vector<1x32xf32>
    %c0_112 = arith.constant 0 : index
    %c3_113 = arith.constant 3 : index
    %c0_114 = arith.constant 0 : index
    %234 = vector.load %arg9[%c0_112, %c3_113, %c0_114] : memref<1x8x32xf32, #tpu.memory_space<vmem>>, vector<1x1x32xf32>
    %235 = vector.shape_cast %234 : vector<1x1x32xf32> to vector<1x32xf32>
    %cst_115 = arith.constant dense<0.000000e+00> : vector<8xf32>
    %236 = vector.multi_reduction <add>, %231, %cst_115 [1] : vector<8x32xf32> to vector<8xf32>
    %237 = vector.shape_cast %236 : vector<8xf32> to vector<8x1xf32>
    %cst_116 = arith.constant 3.200000e+01 : f32
    %238 = vector.broadcast %cst_116 : f32 to vector<8x1xf32>
    %239 = arith.divf %237, %238 : vector<8x1xf32>
    %240 = vector.broadcast %239 : vector<8x1xf32> to vector<8x32xf32>
    %241 = arith.subf %231, %240 : vector<8x32xf32>
    %242 = arith.mulf %241, %241 : vector<8x32xf32>
    %cst_117 = arith.constant dense<0.000000e+00> : vector<8xf32>
    %243 = vector.multi_reduction <add>, %242, %cst_117 [1] : vector<8x32xf32> to vector<8xf32>
    %244 = vector.shape_cast %243 : vector<8xf32> to vector<8x1xf32>
    %cst_118 = arith.constant 3.200000e+01 : f32
    %245 = vector.broadcast %cst_118 : f32 to vector<8x1xf32>
    %246 = arith.divf %244, %245 : vector<8x1xf32>
    %247 = vector.broadcast %239 : vector<8x1xf32> to vector<8x32xf32>
    %248 = arith.subf %231, %247 : vector<8x32xf32>
    %cst_119 = arith.constant 9.99999974E-6 : f32
    %249 = vector.broadcast %cst_119 : f32 to vector<8x1xf32>
    %250 = arith.addf %246, %249 : vector<8x1xf32>
    %251 = math.rsqrt %250 : vector<8x1xf32>
    %252 = vector.broadcast %251 : vector<8x1xf32> to vector<8x32xf32>
    %253 = arith.mulf %248, %252 : vector<8x32xf32>
    %254 = vector.broadcast %233 : vector<1x32xf32> to vector<8x32xf32>
    %255 = arith.mulf %253, %254 : vector<8x32xf32>
    %256 = vector.broadcast %235 : vector<1x32xf32> to vector<8x32xf32>
    %257 = arith.addf %255, %256 : vector<8x32xf32>
    %258 = arith.truncf %257 : vector<8x32xf32> to vector<8x32xbf16>
    %c0_120 = arith.constant 0 : index
    %c0_121 = arith.constant 0 : index
    %c0_122 = arith.constant 0 : index
    %259 = vector.load %arg7[%c0_120, %c0_121, %c0_122] : memref<1x40x128xbf16, #tpu.memory_space<vmem>>, vector<1x32x128xbf16>
    %260 = vector.shape_cast %259 : vector<1x32x128xbf16> to vector<32x128xbf16>
    %cst_123 = arith.constant dense<0.000000e+00> : vector<8x128xf32>
    %261 = tpu.matmul %258, %260, %cst_123 {dimension_numbers = #tpu.dot_dimension_numbers<[1], [0], [0], [1], [0, 0, 1, 1], [], []>} : vector<8x32xbf16>, vector<32x128xbf16>, vector<8x128xf32> -> vector<8x128xf32>
    %c0_124 = arith.constant 0 : index
    %c32 = arith.constant 32 : index
    %c0_125 = arith.constant 0 : index
    %262 = vector.load %arg7[%c0_124, %c32, %c0_125] : memref<1x40x128xbf16, #tpu.memory_space<vmem>>, vector<1x1x128xbf16>
    %263 = vector.shape_cast %262 : vector<1x1x128xbf16> to vector<1x128xbf16>
    %264 = arith.extf %263 : vector<1x128xbf16> to vector<1x128xf32>
    %265 = vector.broadcast %264 : vector<1x128xf32> to vector<8x128xf32>
    %266 = arith.addf %261, %265 : vector<8x128xf32>
    %cst_126 = arith.constant 1.702000e+00 : f32
    %267 = vector.broadcast %cst_126 : f32 to vector<8x128xf32>
    %268 = arith.mulf %267, %266 : vector<8x128xf32>
    %269 = arith.negf %268 : vector<8x128xf32>
    %270 = math.exp %269 : vector<8x128xf32>
    %cst_127 = arith.constant 1.000000e+00 : f32
    %271 = vector.broadcast %cst_127 : f32 to vector<8x128xf32>
    %272 = arith.addf %271, %270 : vector<8x128xf32>
    %273 = arith.divf %271, %272 : vector<8x128xf32>
    %274 = arith.mulf %266, %273 : vector<8x128xf32>
    %275 = arith.truncf %274 : vector<8x128xf32> to vector<8x128xbf16>
    %c0_128 = arith.constant 0 : index
    %c0_129 = arith.constant 0 : index
    %c0_130 = arith.constant 0 : index
    %276 = vector.load %arg8[%c0_128, %c0_129, %c0_130] : memref<1x136x32xbf16, #tpu.memory_space<vmem>>, vector<1x128x32xbf16>
    %277 = vector.shape_cast %276 : vector<1x128x32xbf16> to vector<128x32xbf16>
    %cst_131 = arith.constant dense<0.000000e+00> : vector<8x32xf32>
    %278 = tpu.matmul %275, %277, %cst_131 {dimension_numbers = #tpu.dot_dimension_numbers<[1], [0], [0], [1], [0, 0, 1, 1], [], []>} : vector<8x128xbf16>, vector<128x32xbf16>, vector<8x32xf32> -> vector<8x32xf32>
    %279 = arith.addf %231, %278 : vector<8x32xf32>
    %c0_132 = arith.constant 0 : index
    %c128 = arith.constant 128 : index
    %c0_133 = arith.constant 0 : index
    %280 = vector.load %arg8[%c0_132, %c128, %c0_133] : memref<1x136x32xbf16, #tpu.memory_space<vmem>>, vector<1x1x32xbf16>
    %281 = vector.shape_cast %280 : vector<1x1x32xbf16> to vector<1x32xbf16>
    %282 = arith.extf %281 : vector<1x32xbf16> to vector<1x32xf32>
    %283 = vector.broadcast %282 : vector<1x32xf32> to vector<8x32xf32>
    %284 = arith.addf %279, %283 : vector<8x32xf32>
    %c0_134 = arith.constant 0 : index
    %c0_135 = arith.constant 0 : index
    %285 = vector.load %arg13[%c0_134, %c0_135] : memref<8x32xf32, #tpu.memory_space<vmem>>, vector<8x32xf32>
    tpu.vector_store %arg13[%c0_134, %c0_135], %284 {strides = array<i32>} : memref<8x32xf32, #tpu.memory_space<vmem>>, vector<8x32xf32>,
    %c1_i32 = arith.constant 1 : i32
    %286 = arith.cmpi eq, %arg1, %c1_i32 : i32
    %287 = arith.extui %286 : i1 to i32
    %c0_i32_136 = arith.constant 0 : i32
    %288 = arith.cmpi ne, %287, %c0_i32_136 : i32
    scf.if %288 {
      %289 = tpu.iota {dimensions = array<i32: 1>} : vector<1x8xi32>
      %290 = arith.index_cast %arg0 : i32 to index
      %291 = memref.load %arg2[%290] : memref<2xi32, #tpu.memory_space<smem>>
      %292 = vector.broadcast %291 : i32 to vector<1x8xi32>
      %293 = arith.cmpi eq, %289, %292 : vector<1x8xi32>
      %294 = arith.extui %293 : vector<1x8xi1> to vector<1x8xi32>
      %295 = arith.sitofp %294 : vector<1x8xi32> to vector<1x8xf32>
      %cst_137 = arith.constant dense<0.000000e+00> : vector<1x32xf32>
      %296 = tpu.matmul %295, %284, %cst_137 {dimension_numbers = #tpu.dot_dimension_numbers<[1], [0], [0], [1], [0, 0, 1, 1], [], []>} : vector<1x8xf32>, vector<8x32xf32>, vector<1x32xf32> -> vector<1x32xf32>
      %c0_138 = arith.constant 0 : index
      %c0_139 = arith.constant 0 : index
      %297 = vector.load %arg10[%c0_138, %c0_139] : memref<8x32xf32, #tpu.memory_space<vmem>>, vector<1x32xf32>
      %c1_140 = arith.constant 1 : index
      %c0_141 = arith.constant 0 : index
      %298 = vector.load %arg10[%c1_140, %c0_141] : memref<8x32xf32, #tpu.memory_space<vmem>>, vector<1x32xf32>
      %cst_142 = arith.constant dense<0.000000e+00> : vector<1xf32>
      %299 = vector.multi_reduction <add>, %296, %cst_142 [1] : vector<1x32xf32> to vector<1xf32>
      %300 = vector.shape_cast %299 : vector<1xf32> to vector<1x1xf32>
      %cst_143 = arith.constant 3.200000e+01 : f32
      %301 = vector.broadcast %cst_143 : f32 to vector<1x1xf32>
      %302 = arith.divf %300, %301 : vector<1x1xf32>
      %303 = vector.broadcast %302 : vector<1x1xf32> to vector<1x32xf32>
      %304 = arith.subf %296, %303 : vector<1x32xf32>
      %305 = arith.mulf %304, %304 : vector<1x32xf32>
      %cst_144 = arith.constant dense<0.000000e+00> : vector<1xf32>
      %306 = vector.multi_reduction <add>, %305, %cst_144 [1] : vector<1x32xf32> to vector<1xf32>
      %307 = vector.shape_cast %306 : vector<1xf32> to vector<1x1xf32>
      %cst_145 = arith.constant 3.200000e+01 : f32
      %308 = vector.broadcast %cst_145 : f32 to vector<1x1xf32>
      %309 = arith.divf %307, %308 : vector<1x1xf32>
      %310 = vector.broadcast %302 : vector<1x1xf32> to vector<1x32xf32>
      %311 = arith.subf %296, %310 : vector<1x32xf32>
      %cst_146 = arith.constant 9.99999974E-6 : f32
      %312 = vector.broadcast %cst_146 : f32 to vector<1x1xf32>
      %313 = arith.addf %309, %312 : vector<1x1xf32>
      %314 = math.rsqrt %313 : vector<1x1xf32>
      %315 = vector.broadcast %314 : vector<1x1xf32> to vector<1x32xf32>
      %316 = arith.mulf %311, %315 : vector<1x32xf32>
      %317 = arith.mulf %316, %297 : vector<1x32xf32>
      %318 = arith.addf %317, %298 : vector<1x32xf32>
      %319 = arith.truncf %318 : vector<1x32xf32> to vector<1x32xbf16>
      %c0_147 = arith.constant 0 : index
      %c0_148 = arith.constant 0 : index
      %320 = vector.load %arg11[%c0_147, %c0_148] : memref<32x32xbf16, #tpu.memory_space<vmem>>, vector<32x32xbf16>
      %cst_149 = arith.constant dense<0.000000e+00> : vector<1x32xf32>
      %321 = tpu.matmul %319, %320, %cst_149 {dimension_numbers = #tpu.dot_dimension_numbers<[1], [0], [0], [1], [0, 0, 1, 1], [], []>} : vector<1x32xbf16>, vector<32x32xbf16>, vector<1x32xf32> -> vector<1x32xf32>
      %322 = vector.shape_cast %321 : vector<1x32xf32> to vector<1x32xf32>
      %323 = vector.broadcast %322 : vector<1x32xf32> to vector<8x32xf32>
      %c0_150 = arith.constant 0 : index
      %c0_151 = arith.constant 0 : index
      %c0_152 = arith.constant 0 : index
      %324 = vector.load %arg12[%c0_150, %c0_151, %c0_152] : memref<1x8x32xf32, #tpu.memory_space<vmem>>, vector<1x8x32xf32>
      %325 = vector.shape_cast %324 : vector<1x8x32xf32> to vector<8x32xf32>
      %326 = vector.shape_cast %323 : vector<8x32xf32> to vector<1x8x32xf32>
      tpu.vector_store %arg12[%c0_150, %c0_151, %c0_152], %326 {strides = array<i32>} : memref<1x8x32xf32, #tpu.memory_space<vmem>>, vector<1x8x32xf32>,
    } else {
    }
    return
  }
  func.func @transform_0(%arg0: i32, %arg1: i32, %arg2: memref<2xi32, #tpu.memory_space<smem>>) -> (i32, i32, i32) {
    %c0_i32 = arith.constant 0 : i32
    %c0_i32_0 = arith.constant 0 : i32
    %c0_i32_1 = arith.constant 0 : i32
    return %arg0, %c0_i32, %c0_i32_0 : i32, i32, i32
  }
  func.func @transform_1(%arg0: i32, %arg1: i32, %arg2: memref<2xi32, #tpu.memory_space<smem>>) -> (i32, i32) {
    %c0_i32 = arith.constant 0 : i32
    %c0_i32_0 = arith.constant 0 : i32
    %c0_i32_1 = arith.constant 0 : i32
    return %c0_i32, %c0_i32_0 : i32, i32
  }
  func.func @transform_2(%arg0: i32, %arg1: i32, %arg2: memref<2xi32, #tpu.memory_space<smem>>) -> (i32, i32, i32, i32) {
    %c0_i32 = arith.constant 0 : i32
    %c0_i32_0 = arith.constant 0 : i32
    %c0_i32_1 = arith.constant 0 : i32
    %c0_i32_2 = arith.constant 0 : i32
    return %arg1, %c0_i32, %c0_i32_0, %c0_i32_1 : i32, i32, i32, i32
  }
  func.func @transform_3(%arg0: i32, %arg1: i32, %arg2: memref<2xi32, #tpu.memory_space<smem>>) -> (i32, i32, i32, i32) {
    %c0_i32 = arith.constant 0 : i32
    %c0_i32_0 = arith.constant 0 : i32
    %c0_i32_1 = arith.constant 0 : i32
    %c0_i32_2 = arith.constant 0 : i32
    return %arg1, %c0_i32, %c0_i32_0, %c0_i32_1 : i32, i32, i32, i32
  }
  func.func @transform_4(%arg0: i32, %arg1: i32, %arg2: memref<2xi32, #tpu.memory_space<smem>>) -> (i32, i32, i32) {
    %c0_i32 = arith.constant 0 : i32
    %c0_i32_0 = arith.constant 0 : i32
    %c0_i32_1 = arith.constant 0 : i32
    return %arg1, %c0_i32, %c0_i32_0 : i32, i32, i32
  }
  func.func @transform_5(%arg0: i32, %arg1: i32, %arg2: memref<2xi32, #tpu.memory_space<smem>>) -> (i32, i32, i32) {
    %c0_i32 = arith.constant 0 : i32
    %c0_i32_0 = arith.constant 0 : i32
    %c0_i32_1 = arith.constant 0 : i32
    return %arg1, %c0_i32, %c0_i32_0 : i32, i32, i32
  }
  func.func @transform_6(%arg0: i32, %arg1: i32, %arg2: memref<2xi32, #tpu.memory_space<smem>>) -> (i32, i32, i32) {
    %c0_i32 = arith.constant 0 : i32
    %c0_i32_0 = arith.constant 0 : i32
    %c0_i32_1 = arith.constant 0 : i32
    return %arg1, %c0_i32, %c0_i32_0 : i32, i32, i32
  }
  func.func @transform_7(%arg0: i32, %arg1: i32, %arg2: memref<2xi32, #tpu.memory_space<smem>>) -> (i32, i32) {
    %c0_i32 = arith.constant 0 : i32
    %c0_i32_0 = arith.constant 0 : i32
    %c0_i32_1 = arith.constant 0 : i32
    return %c0_i32, %c0_i32_0 : i32, i32
  }
  func.func @transform_8(%arg0: i32, %arg1: i32, %arg2: memref<2xi32, #tpu.memory_space<smem>>) -> (i32, i32) {
    %c0_i32 = arith.constant 0 : i32
    %c0_i32_0 = arith.constant 0 : i32
    %c0_i32_1 = arith.constant 0 : i32
    return %c0_i32, %c0_i32_0 : i32, i32
  }
  func.func @transform_9(%arg0: i32, %arg1: i32, %arg2: memref<2xi32, #tpu.memory_space<smem>>) -> (i32, i32, i32) {
    %c0_i32 = arith.constant 0 : i32
    %c0_i32_0 = arith.constant 0 : i32
    %c0_i32_1 = arith.constant 0 : i32
    return %arg0, %c0_i32, %c0_i32_0 : i32, i32, i32
  }
}

</mosaic_0001>

<bundles_post_ra>
// kernel: tpu_custom_call.1
= control target key start
LH: loop header
LB: loop body
LE: loop exit
PB: predicated region body
PF: predicated region fallthrough
CT: control target
= control target key end

     0   :  { %s3611_s0 = inlined_call_operand.vmem [shape: s32[2], index: 0, kind: input, shape index: {}]   ;;  %s3612_s1 = inlined_call_operand.vmem [shape: bf16[2,8,32], index: 1, kind: input, shape index: {}]   ;;  %s3613_s2 = inlined_call_operand.vmem [shape: bf16[8,32], index: 2, kind: input, shape index: {}]   ;;  %s3614_s3 = inlined_call_operand.vmem [shape: bf16[2,12,40,8], index: 3, kind: input, shape index: {}]   ;;  %s3615_s4 = inlined_call_operand.vmem [shape: bf16[2,4,8,32], index: 4, kind: input, shape index: {}]   ;;  %s3616_s5 = inlined_call_operand.vmem [shape: bf16[2,40,128], index: 5, kind: input, shape index: {}]   ;;  %s3617_s6 = inlined_call_operand.vmem [shape: bf16[2,136,32], index: 6, kind: input, shape index: {}]   ;;  %s3618_s7 = inlined_call_operand.vmem [shape: f32[2,8,32], index: 7, kind: input, shape index: {}]   ;;  %s3619_s8 = inlined_call_operand.vmem [shape: f32[8,32], index: 8, kind: input, shape index: {}]   ;;  %s3620_s9 = inlined_call_operand.vmem [shape: bf16[32,32], index: 9, kind: input, shape index: {}]   ;;  %s3621_s10 = inlined_call_operand.hbm [shape: f32[2,8,32], index: 10, kind: output, shape index: {}]  }
   0x1   :  { %3634 = sst [smem:[#allocation19_spill]] %s3612_s1  ;;  %s15_s15 = sshll.u32 %s3611_s0, 4  ;;  %s16_s15 = int_to_ptr.vmem [resolvable:$true] %s15_s15 }
   0x2   :  { %3635 = sst [smem:[#allocation20_spill]] %s3621_s10  ;;  %s2987_s16 = scalar_lea.vmem %s16_s15, 16 }
   0x3   :  { %p2988_p0 = scmp.ne.s32.totalorder %s16_s15, %s2987_s16  ;;  %p2992_p1 = scmp.lt.s32.totalorder %s16_s15, %s16_s15 }
   0x4   :  { %p2993_p2 = scmp.lt.s32.totalorder %s2987_s16, %s2987_s16 }
   0x6   :  { %p2994_p3 = por %p2993_p2, %p2992_p1 }
   0x8   :  { %p2995_p4 = pnand %p2994_p3, %p2988_p0 }
   0xa   :  { %2998 = shalt.err (!%p2995_p4)  }
   0xb   :  { %s3095_s17 = smov [#allocation4]  }
   0xc   :  { %18 = dma.vmem_to_smem %s16_s15, 16, %s3095_s17, [#allocation3] }
   0xd   :  { %3057 = dma.done.wait [#allocation3], 16 }
   0xe   :  { %3058 = vsyncadd [#allocation3], 4294967280 }
   0xf   :  { %20 = sfence }
  0x10   :  { %21 = vsyncpa [#allocation6], 0 }
  0x11   :  { %23 = vsyncpa [#allocation6 + $0x1], 0  ;;  %s3159_s18 = smov 0   ;;  %s3161_s19 = smov 0  }
  0x12   :  { %s3163_s0 = smov 0   ;;  %s3165_s20 = smov 0  }
  0x13   :  { %s3167_s21 = smov 0   ;;  %s3169_s22 = smov 0  }
  0x14   :  { %s3171_s23 = smov 0   ;;  %s3173_s24 = smov 0  }
  0x15 LB: > { %3636 = sst [smem:[#allocation9_spill]] %s3065_s18  ;;  %s2412_s25 = sadd.s32 4294967295, %s3093_s24   ;;  %s3093_s24 = sphi %s3173_s24, %s29_s24   ;;  %s3089_s23 = sphi %s3171_s23, %s3660_s23   ;;  %s3085_s22 = sphi %s3169_s22, %s3659_s22   ;;  %s3081_s21 = sphi %s3167_s21, %s3658_s21   ;;  %s3077_s20 = sphi %s3165_s20, %s3657_s20   ;;  %s3073_s0 = sphi %s3163_s0, %s3656_s0   ;;  %s3069_s19 = sphi %s3161_s19, %s3662_s19   ;;  %s3065_s18 = sphi %s3159_s18, %s3661_s18  }
  0x16   : > { %3637 = sst [smem:[#allocation10_spill]] %s3073_s0  ;;  %s2413_s26 = sadd.s32 4294967294, %s3093_s24  }
  0x17   : > { %3638 = sst [smem:[#allocation11_spill]] %s3085_s22  ;;  %s38_s27 = sadd.s32 1, %s3085_s22 }
  0x18   : > { %3639 = sst [smem:[#allocation12_spill]] %s3089_s23  ;;  %p39_p5 = scmp.ge.s32.totalorder %s38_s27, 2 }
  0x19   : > { %3640 = sst [smem:[#allocation13_spill]] %s3093_s24  ;;  %s41_s28 = sadd.s32 1, %s3089_s23 }
  0x1a   : > { %p277_p6 = scmp.ne.s32.totalorder %s3073_s0, %s3069_s19  ;;  %p278_p7 = scmp.eq.s32.totalorder %s2412_s25, 3 }
  0x1b   : > { %s3664_s27 = smov (%p39_p5, %s38_s27), 0  ;;  %s3666_s28 = smov (!%p39_p5, %s41_s28), %s3089_s23 }
  0x1c   : > { %3641 = sst [smem:[#allocation14_spill]] %s3664_s27  ;;  %p3208_p8 = por %p278_p7, %p277_p6 }
  0x1d   : > { %p283_p9 = scmp.ne.s32.totalorder %s3069_s19, %s3065_s18  ;;  %p43_p10 = scmp.ge.s32.totalorder %s3666_s28, 2 }
  0x1e   : > { %s3642_s29 = scalar_select %p3208_p8, 1, 0 }
  0x1f   : > { %p284_p11 = scmp.eq.s32.totalorder %s2413_s26, 3  ;;  %p2416_p12 = scmp.ge.s32.totalorder %s3093_s24, 1 }
  0x20   : > { %3643 = sst [smem:[#allocation15_spill]] %s3642_s29  ;;  %p357_p13 = scmp.lt.s32.totalorder %s3093_s24, 5 }
  0x21   : > { %s3668_s28 = smov (%p43_p10, %s3666_s28), 0  ;;  %p3218_p0 = por %p284_p11, %p283_p9 }
  0x22   : > { %3644 = sst [smem:[#allocation16_spill]] %s3668_s28  ;;  %p358_p1 = pnand %p2416_p12, %p357_p13 }
  0x23   : > { %s3645_s30 = scalar_select %p3218_p0, 1, 0 }
  0x24   : > { %s264_s11 = ssub.s32 %s3089_s23, %s3668_s28  ;;  %s267_s12 = sadd.s32 1, %s3073_s0 }
  0x25   : > { %3646 = sst [smem:[#allocation17_spill]] %s3645_s30  ;;  %p265_p2 = scmp.eq.s32.totalorder %s264_s11, 0 }
  0x26   : > { %361 = sbr.rel (%p358_p1) target bundleno = 5513 (0x1589), region = 56  ;;  %s3627_s14 = sand.u32 (!%p358_p1), 1, %s3069_s19  }
  0x27   : > { %s3226_s13 = scalar_select %p265_p2, %s3073_s0, %s267_s12  }
  0x28   : > { %p416_p3 = scmp.lt.s32.totalorder (!%p358_p1), %s3081_s21, 1  ;;  %s3232_s15 = sshll.u32 (!%p358_p1), %s3627_s14, 3 }
  0x29   : > { %3647 = sst [smem:[#allocation18_spill]] %s3226_s13  ;;  %p420_p4 = scmp.lt.s32.totalorder (!%p358_p1), %s3077_s20, 1 }
  0x2a   : > { %s3648_s1 = sld [smem:[#allocation19_spill]] (!%p358_p1)  ;;  %s415_s30 = scalar_lea.vmem (!%p358_p1), [#allocation5], %s3232_s15 }
  0x2b   : > { %s417_s16 = scalar_select %p416_p3, %s3081_s21, 1 }
  0x2c   : > { %s421_s17 = scalar_select %p420_p4, %s3077_s20, 1 }
  0x2d   : > { %s2418_s25 = sshll.u32 %s417_s16, 2  ;;  %p2425_p5 = scmp.ne.s32.totalorder %s3077_s20, 0 }
  0x2e   : > { %s2846_s28 = smul.u32 240, %s421_s17  ;;  %s2559_s27 = sshll.u32 %s421_s17, 4 }
  0x2f   : > { %s2847_s23 = smul.u32 20, %s421_s17  ;;  %s3248_s18 = scalar_lea.vmem %s3615_s4, %s2559_s27 }
  0x30   : > { %s419_s12 = scalar_lea.vmem %s3648_s1, %s2418_s25  ;;  %s3243_s0 = scalar_lea.vmem %s3614_s3, %s2846_s28 }
  0x31   : > { %s3253_s16 = scalar_lea.vmem %s3616_s5, %s2847_s23  ;;  %s2848_s26 = smul.u32 68, %s421_s17 }
  0x32   : > { %s2424_s25 = sshll.u32 %s421_s17, 3  ;;  %448 = sbr.rel (%p2425_p5) target bundleno = 62 (0x3e), region = 60 }
  0x33   : > { %s3258_s29 = scalar_lea.vmem %s3617_s6, %s2848_s26  ;;  %s3263_s13 = scalar_lea.vmem %s3618_s7, %s2424_s25 }
  0x37   : > { %v449_v0 = vld [vmem:[%s419_s12] sm:$0xf]  ;;  %vm454_vm0 = vcmask 261120  }
  0x38   : > { %v451_v1 = vld [vmem:[%s3613_s2] sm:$0xf]  ;;  %v450_v2 = vunpack.c.l.bf16 %v449_v0 }
  0x39   : > { %v452_v3 = vunpack.c.l.bf16 %v451_v1 }
  0x3b   : > { %v453_v4 = vadd.f32 %v452_v3, %v450_v2 }
  0x3d   : > { %455 = vst.msk [vmem:[#allocation2] sm:$0xff] %vm454_vm0, %v453_v4 }
  0x3e PF: > { %vm464_vm1 = vcmask 261120   ;;  %v2925_v12 = vld [vmem:[%s3243_s0 + $0x8] sm:$0xff]   ;;  %v3096_v13 = vmov 0.0   ;;  %v2926_v14 = vld [vmem:[%s3243_s0] sm:$0xff]   ;;  %vm3097_vm2 = vmmov 0   ;;  %v2927_v24 = vld [vmem:[%s3243_s0 + $0x58] sm:$0xff]   ;;  %v457_v29 = vlaneseq }
  0x3f   : > { %2637 = vmatprep.subr.bf16.mxu0 %v3096_v13  ;;  %2661 = vmatprep.subr.bf16.mxu1 %v3096_v13  ;;  %v2426_v19 = vld [vmem:[%s3263_s13] ss:$0 sm:$0xff]  ;;  %v2427_v21 = vld [vmem:[%s3263_s13 + $0x1] ss:$0 sm:$0xff]  ;;  %v2928_v26 = vld [vmem:[%s3243_s0 + $0x50] sm:$0xff]   ;;  %vm684_vm3 = vcmask 64512  }
  0x40   : > { %2638 = vmatpush3.bf16.msra.mxu0 %v2925_v12  ;;  %2641 = vmatprep.mubr.msk.bf16.mxu0 %vm3097_vm2, %v3096_v13  ;;  %v2929_v27 = vld [vmem:[%s3243_s0 + $0xa8] sm:$0xff]   ;;  %v2930_v28 = vld [vmem:[%s3243_s0 + $0xa0] sm:$0xff]   ;;  %v3310_v30 = vshrl.u32 %v457_v29, 7  ;;  %vm748_vm4 = vcmask 1043456   ;;  %v2932_v62 = vld [vmem:[%s3243_s0 + $0x14] sm:$0xff]   ;;  %v3346_v1 = vand.u32 127, %v457_v29 }
  0x41   : > { %2639 = vmatprep.subr.bf16.mxu0 %v3096_v13  ;;  %2663 = vmatprep.mubr.msk.bf16.mxu1 %vm3097_vm2, %v3096_v13  ;;  %v494_v31 = vld [vmem:[%s3243_s0 + $0x10] ss:$80 sps:$4 sm:$0xff]   ;;  %v2934_v0 = vld [vmem:[%s3243_s0 + $0xb4] sm:$0xff]   ;;  %p2549_p6 = scmp.ne.s32.totalorder %s3077_s20, 1 }
  0x42   : > { %v567_v33 = vunpack.c.h.bf16 %v494_v31  ;;  %v507_v35 = vunpack.c.l.bf16 %v494_v31  ;;  %v3314_v36 = vsub.s32 0, %v3310_v30  ;;  %v3318_v40 = vld [vmem:[%s3243_s0 + $0x24] ss:$140 sps:$4 sm:$0xff]   ;;  %v2931_v56 = vld [vmem:[%s3243_s0 + $0x1c] sm:$0xff]   ;;  %vm461_vm5 = vcmp.le.s32.totalorder %v3346_v1, %v3310_v30  ;;  %s2107_s1 = sld [smem:[#allocation4 + %s3081_s21]] (!%p2549_p6) }
  0x43   : > { %v624_v44 = vunpack.c.h.bf16 %v3318_v40  ;;  %v2933_v63 = vld [vmem:[%s3243_s0 + $0xbc] sm:$0xff]  }
  0x44   : > { %v3270_v5 = vld [vmem:[#allocation2] sm:$0xff]  ;;  %2640 = vmatpush3.bf16.msra.mxu0 %v2926_v14  ;;  %v571_v38 = vrot.slane %v567_v33, %v3314_v36  ;;  %v511_v41 = vrot.slane %v507_v35, %v3314_v36 }
  0x45   : > { %v465_v6 = vsel %vm464_vm1, %v3270_v5, 0.0  ;;  %2645 = vmatprep.subr.bf16.mxu0 %v3096_v13  ;;  %v628_v50 = vrot.slane %v624_v44, %v3314_v36 }
  0x46   : > { %466 = vadd.xlane.f32.xlu0 %v465_v6 }
  0xcf   : > { %v467_v7 = vpop.xlane.xlu0 %466 }
  0xd0   : > { %v469_v8 = vmul.f32 0.03125, %v467_v7 }
  0xd2   : > { %v470_v9 = vsub.f32 %v3270_v5, %v469_v8 }
  0xd4   : > { %v471_v10 = vmul.f32 %v470_v9, %v470_v9 }
  0xd6   : > { %v472_v11 = vsel %vm464_vm1, %v471_v10, 0.0 }
  0xd7   : > { %473 = vadd.xlane.f32.xlu0 %v472_v11 }
 0x160   : > { %v474_v15 = vpop.xlane.xlu0 %473 }
 0x161   : > { %v475_v16 = vmul.f32 0.03125, %v474_v15 }
 0x163   : > { %v476_v17 = vadd.f32 1e-05, %v475_v16 }
 0x165   : > { %2959 = vrsqrt.f32 %v476_v17 }
 0x172   : > { %v2960_v18 = vpop.eup %2959 }
 0x173   : > { %v478_v20 = vmul.f32 %v2960_v18, %v470_v9  ;;  %v2463_v9 = vld [vmem:[%s3243_s0 + $0x74] ss:$80 sps:$4 sm:$0xff]  }
 0x174   : > { %v926_v11 = vunpack.c.h.bf16 %v2463_v9 }
 0x175   : > { %v483_v22 = vmul.f32 %v2426_v19, %v478_v20 }
 0x176   : > { %v930_v15 = vrot.slane %v926_v11, %v3314_v36 }
 0x177   : > { %v488_v23 = vadd.f32 %v2427_v21, %v483_v22 }
 0x179   : > { %v3289_v25 = vpack.c.bf16 %v488_v23, %v488_v23 }
 0x17b   : > { %2642 = vmatmul.mubr.msk.bf16.vlgmr.msra.gmra.mxu0 %vm464_vm1, %v3289_v25 }
 0x17c   : > { %2646 = vmatpush3.bf16.msra.mxu0 %v2927_v24  ;;  %2649 = vmatprep.mubr.msk.bf16.mxu0 %vm3097_vm2, %v3096_v13 }
 0x17d   : > { %2647 = vmatprep.subr.bf16.mxu0 %v3096_v13 }
 0x180   : > { %2648 = vmatpush3.bf16.msra.mxu0 %v2928_v26 }
 0x181   : > { %2653 = vmatprep.subr.bf16.mxu0 %v3096_v13 }
 0x183   : > { %2650 = vmatmul.mubr.msk.bf16.vlgmr.msra.gmra.mxu0 %vm464_vm1, %v3289_v25 }
 0x184   : > { %2654 = vmatpush3.bf16.msra.mxu0 %v2929_v27  ;;  %2657 = vmatprep.mubr.msk.bf16.mxu0 %vm3097_vm2, %v3096_v13 }
 0x185   : > { %2655 = vmatprep.subr.bf16.mxu0 %v3096_v13 }
 0x188   : > { %2656 = vmatpush3.bf16.msra.mxu0 %v2930_v28 }
 0x189   : > { %2667 = vmatprep.subr.bf16.mxu0 %v3096_v13 }
 0x18b   : > { %2658 = vmatmul.mubr.msk.bf16.vlgmr.msra.gmra.mxu0 %vm464_vm1, %v3289_v25 }
 0x18c   : > { %2669 = vmatprep.mubr.msk.bf16.mxu0 %vm3097_vm2, %v3096_v13 }
 0x23b   : > { %v561_v32 = vpop.f32.mrf.mxu0 }
 0x23c   : > { %v562_v46 = vadd.f32 %v561_v32, %v511_v41 }
 0x23d   : > { %v2643_v34 = vpop.f32.mrf.mxu0 }
 0x23e   : > { %v681_v52 = vmul.f32 0.35355338, %v562_v46  ;;  %v2935_v34 = vld [vmem:[%s3243_s0 + $0x6c] sm:$0xff]  }
 0x23f   : > { %v564_v37 = vpop.f32.mrf.mxu0 }
 0x240   : > { %v682_v57 = vpack.c.bf16 %v681_v52, %v681_v52  ;;  %v2936_v37 = vld [vmem:[%s3243_s0 + $0x64] sm:$0xff]  }
 0x241   : > { %v2644_v39 = vpop.f32.mrf.mxu0 }
 0x242   : > { %v869_v39 = vunpack.c.l.bf16 %v2463_v9  ;;  %v793_v9 = vld [vmem:[%s3248_s18] sm:$0xf] }
 0x243   : > { %v618_v42 = vpop.f32.mrf.mxu0 }
 0x244   : > { %v619_v43 = vadd.f32 %v618_v42, %v571_v38  ;;  %v812_v42 = vunpack.c.l.bf16 %v3318_v40  ;;  %v873_v44 = vrot.slane %v869_v39, %v3314_v36 }
 0x245   : > { %v2651_v45 = vpop.f32.mrf.mxu0 }
 0x246   : > { %v683_v47 = vpack.c.bf16 %v619_v43, %v619_v43  ;;  %v816_v46 = vrot.slane %v812_v42, %v3314_v36 }
 0x247   : > { %v621_v48 = vpop.f32.mrf.mxu0 }
 0x248   : > { %v689_v49 = vsel %vm684_vm3, %v683_v47, 0 }
 0x249   : > { %v2652_v51 = vpop.f32.mrf.mxu0  ;;  %2662 = vmatpush3.bf16.xpose.msra.mxu1 %v689_v49 }
 0x24a   : > { %2673 = vmatprep.subr.bf16.mxu1 %v3096_v13 }
 0x24b   : > { %v675_v53 = vpop.f32.mrf.mxu0 }
 0x24c   : > { %v676_v54 = vadd.f32 %v675_v53, %v628_v50 }
 0x24d   : > { %v2659_v55 = vpop.f32.mrf.mxu0 }
 0x24e   : > { %v744_v58 = vpack.c.bf16 %v676_v54, %v676_v54 }
 0x24f   : > { %v678_v59 = vpop.f32.mrf.mxu0 }
 0x250   : > { %v750_v60 = vsel %vm748_vm4, %v744_v58, 0  ;;  %2664 = vmatmul.mubr.msk.bf16.vlgmr.msra.gmra.mxu1 %vm684_vm3, %v682_v57 }
 0x251   : > { %v2660_v61 = vpop.f32.mrf.mxu0  ;;  %2668 = vmatpush3.bf16.msra.mxu0 %v750_v60  ;;  %2674 = vmatpush3.bf16.msra.mxu1 %v2931_v56 }
 0x252   : > { %2675 = vmatprep.subr.bf16.mxu1 %v3096_v13  ;;  %2677 = vmatprep.mubr.msk.bf16.mxu1 %vm3097_vm2, %v3096_v13 }
 0x253   : > { %2681 = vmatprep.subr.bf16.mxu0 %v3096_v13 }
 0x255   : > { %2676 = vmatpush3.bf16.msra.mxu1 %v2932_v62 }
 0x256   : > { %2689 = vmatprep.subr.bf16.mxu1 %v3096_v13 }
 0x258   : > { %2678 = vmatmul.mubr.msk.bf16.vlgmr.msra.gmra.mxu1 %vm464_vm1, %v3289_v25 }
 0x259   : > { %2690 = vmatpush3.bf16.msra.mxu1 %v2933_v63  ;;  %2693 = vmatprep.mubr.msk.bf16.mxu1 %vm3097_vm2, %v3096_v13 }
 0x25a   : > { %2691 = vmatprep.subr.bf16.mxu1 %v3096_v13 }
 0x25d   : > { %2692 = vmatpush3.bf16.msra.mxu1 %v2934_v0 }
 0x25e   : > { %2703 = vmatprep.subr.bf16.mxu1 %v3096_v13 }
 0x260   : > { %2694 = vmatmul.mubr.msk.bf16.vlgmr.msra.gmra.mxu1 %vm464_vm1, %v3289_v25 }
 0x261   : > { %2705 = vmatprep.mubr.msk.bf16.mxu1 %vm3097_vm2, %v3096_v13 }
 0x310   : > { %v725_v2 = vpop.f32.mrf.mxu1 }
 0x311   : > { %v731_v3 = vsel %vm461_vm5, %v725_v2, -1e+09 }
 0x312   : > { %v2665_v4 = vpop.f32.mrf.mxu1  ;;  %v732_v6 = vsel %vm684_vm3, %v731_v3, -inf }
 0x313   : > { %733 = vmax.xlane.f32.xlu1 %v732_v6  ;;  %v2475_v4 = vld [vmem:[%s3248_s18 + $0x4] sm:$0xf] }
 0x314   : > { %v728_v7 = vpop.f32.mrf.mxu1  ;;  %v1099_v6 = vsel %vm748_vm4, %v2475_v4, 0 }
 0x316   : > { %v2666_v8 = vpop.f32.mrf.mxu1 }
 0x318   : > { %v863_v10 = vpop.f32.mrf.mxu1 }
 0x319   : > { %v864_v50 = vadd.f32 %v863_v10, %v816_v46 }
 0x31a   : > { %v2679_v12 = vpop.f32.mrf.mxu1 }
 0x31b   : > { %v983_v55 = vmul.f32 0.35355338, %v864_v50  ;;  %v1145_v12 = vsel %vm748_vm4, %v793_v9, 0  ;;  %v3432_v50 = vld [vmem:[%s3243_s0 + $0x4c] ss:$140 sps:$4 sm:$0xff]  }
 0x31c   : > { %v866_v14 = vpop.f32.mrf.mxu1 }
 0x31d   : > { %v984_v40 = vpack.c.bf16 %v983_v55, %v983_v55  ;;  %v2937_v14 = vld [vmem:[%s3243_s0 + $0x80] sm:$0xff]  }
 0x31e   : > { %v2680_v16 = vpop.f32.mrf.mxu1 }
 0x31f   : > { %v2938_v16 = vld [vmem:[%s3243_s0 + $0x78] sm:$0xff]  }
 0x320   : > { %v977_v17 = vpop.f32.mrf.mxu1 }
 0x321   : > { %v978_v18 = vadd.f32 %v977_v17, %v930_v15 }
 0x322   : > { %v2695_v19 = vpop.f32.mrf.mxu1 }
 0x323   : > { %v1045_v20 = vpack.c.bf16 %v978_v18, %v978_v18  ;;  %v2939_v18 = vld [vmem:[%s3243_s0 + $0x30] sm:$0xff]  }
 0x324   : > { %v980_v21 = vpop.f32.mrf.mxu1 }
 0x325   : > { %v1050_v22 = vsel %vm748_vm4, %v1045_v20, 0 }
 0x326   : > { %v2696_v23 = vpop.f32.mrf.mxu1  ;;  %2704 = vmatpush3.bf16.msra.mxu1 %v1050_v22  ;;  %v2940_v22 = vld [vmem:[%s3243_s0 + $0x28] sm:$0xff]  }
 0x327   : > { %2715 = vmatprep.subr.bf16.mxu1 %v3096_v13 }
 0x39c   : > { %v734_v24 = vpop.xlane.xlu1 %733 }
 0x39d   : > { %v735_v26 = vsub.f32 %v731_v3, %v734_v24  ;;  %v2487_v24 = vld [vmem:[%s3243_s0 + $0x38] ss:$80 sps:$4 sm:$0xff]  }
 0x39f   : > { %v736_v27 = vmul.f32 1.442695, %v735_v26 }
 0x3a1   : > { %2961 = vpow2.f32 %v736_v27  ;;  %v2941_v27 = vld [vmem:[%s3243_s0 + $0xd0] sm:$0xff]  }
 0x3ae   : > { %v2962_v28 = vpop.eup %2961 }
 0x3af   : > { %v738_v29 = vsel %vm684_vm3, %v2962_v28, 0.0 }
 0x3b0   : > { %739 = vadd.xlane.f32.xlu1 %v738_v29 }
 0x439   : > { %v740_v31 = vpop.xlane.xlu1 %739 }
 0x43a   : > { %2963 = vrcp.f32 %v740_v31 }
 0x447   : > { %v2964_v32 = vpop.eup %2963 }
 0x448   : > { %v742_v33 = vmul.f32 %v2964_v32, %v2962_v28  ;;  %v1262_v28 = vunpack.c.h.bf16 %v2487_v24  ;;  %v2942_v32 = vld [vmem:[%s3243_s0 + $0xc8] sm:$0xff]  }
 0x44a   : > { %v743_v35 = vpack.c.bf16 %v742_v33, %v742_v33  ;;  %v1266_v33 = vrot.slane %v1262_v28, %v3314_v36 }
 0x44c   : > { %2670 = vmatmul.mubr.msk.bf16.vlgmr.msra.gmra.mxu0 %vm684_vm3, %v743_v35 }
 0x44d   : > { %2682 = vmatpush3.bf16.msra.mxu0 %v2935_v34  ;;  %2685 = vmatprep.mubr.msk.bf16.mxu0 %vm3097_vm2, %v3096_v13 }
 0x44e   : > { %2683 = vmatprep.subr.bf16.mxu0 %v3096_v13 }
 0x451   : > { %2684 = vmatpush3.bf16.msra.mxu0 %v2936_v37 }
 0x452   : > { %2697 = vmatprep.subr.bf16.mxu0 %v3096_v13 }
 0x454   : > { %2686 = vmatmul.mubr.msk.bf16.vlgmr.msra.gmra.mxu0 %vm464_vm1, %v3289_v25 }
 0x455   : > { %2699 = vmatprep.mubr.msk.bf16.mxu0 %vm3097_vm2, %v3096_v13 }
 0x50c   : > { %v786_v38 = vpop.f32.mrf.mxu0 }
 0x50d   : > { %v792_v15 = vpack.c.bf16 %v786_v38, %v786_v38 }
 0x50e   : > { %v2671_v41 = vpop.f32.mrf.mxu0 }
 0x510   : > { %v789_v43 = vpop.f32.mrf.mxu0 }
 0x512   : > { %v2672_v45 = vpop.f32.mrf.mxu0 }
 0x513   : > { %v1205_v45 = vunpack.c.l.bf16 %v2487_v24  ;;  %v2945_v24 = vld [vmem:[%s3243_s0 + $0xe4] sm:$0xff]  }
 0x514   : > { %v920_v47 = vpop.f32.mrf.mxu0 }
 0x515   : > { %v921_v48 = vadd.f32 %v920_v47, %v873_v44 }
 0x516   : > { %v2687_v49 = vpop.f32.mrf.mxu0 }
 0x517   : > { %v985_v51 = vpack.c.bf16 %v921_v48, %v921_v48  ;;  %v1209_v48 = vrot.slane %v1205_v45, %v3314_v36 }
 0x518   : > { %v923_v52 = vpop.f32.mrf.mxu0 }
 0x519   : > { %v990_v53 = vsel %vm684_vm3, %v985_v51, 0 }
 0x51a   : > { %v2688_v54 = vpop.f32.mrf.mxu0  ;;  %2698 = vmatpush3.bf16.xpose.msra.mxu0 %v990_v53  ;;  %v1319_v53 = vunpack.c.h.bf16 %v3432_v50 }
 0x51b   : > { %2709 = vmatprep.subr.bf16.mxu0 %v3096_v13 }
 0x521   : > { %2700 = vmatmul.mubr.msk.bf16.vlgmr.msra.gmra.mxu0 %vm684_vm3, %v984_v40 }
 0x522   : > { %2711 = vmatprep.mubr.msk.bf16.mxu0 %vm3097_vm2, %v3096_v13  ;;  %2710 = vmatpush3.bf16.msra.mxu0 %v1099_v6 }
 0x523   : > { %2721 = vmatprep.subr.bf16.mxu0 %v3096_v13 }
 0x5e1   : > { %v1026_v56 = vpop.f32.mrf.mxu0 }
 0x5e2   : > { %v1032_v57 = vsel %vm461_vm5, %v1026_v56, -1e+09 }
 0x5e3   : > { %v2701_v58 = vpop.f32.mrf.mxu0  ;;  %v1033_v59 = vsel %vm684_vm3, %v1032_v57, -inf }
 0x5e4   : > { %1034 = vmax.xlane.f32.xlu0 %v1033_v59 }
 0x5e5   : > { %v1029_v60 = vpop.f32.mrf.mxu0 }
 0x5e7   : > { %v2702_v61 = vpop.f32.mrf.mxu0 }
 0x66d   : > { %v1035_v62 = vpop.xlane.xlu0 %1034 }
 0x66e   : > { %v1036_v63 = vsub.f32 %v1032_v57, %v1035_v62  ;;  %v1323_v57 = vrot.slane %v1319_v53, %v3314_v36 }
 0x670   : > { %v1037_v0 = vmul.f32 1.442695, %v1036_v63 }
 0x672   : > { %2965 = vpow2.f32 %v1037_v0 }
 0x67f   : > { %v2966_v2 = vpop.eup %2965 }
 0x680   : > { %v1039_v3 = vsel %vm684_vm3, %v2966_v2, 0.0 }
 0x681   : > { %1040 = vadd.xlane.f32.xlu1 %v1039_v3 }
 0x70a   : > { %v1041_v7 = vpop.xlane.xlu1 %1040 }
 0x70b   : > { %2967 = vrcp.f32 %v1041_v7 }
 0x718   : > { %v2968_v8 = vpop.eup %2967 }
 0x719   : > { %v1043_v10 = vmul.f32 %v2968_v8, %v2966_v2 }
 0x71b   : > { %v1044_v11 = vpack.c.bf16 %v1043_v10, %v1043_v10 }
 0x71d   : > { %2706 = vmatmul.mubr.msk.bf16.vlgmr.msra.gmra.mxu1 %vm684_vm3, %v1044_v11 }
 0x71e   : > { %2716 = vmatpush3.bf16.msra.mxu1 %v1145_v12  ;;  %2717 = vmatprep.mubr.msk.bf16.mxu1 %vm3097_vm2, %v3096_v13 }
 0x71f   : > { %2729 = vmatprep.subr.bf16.mxu1 %v3096_v13 }
 0x725   : > { %2718 = vmatmul.mubr.msk.bf16.vlgmr.msra.gmra.mxu1 %vm684_vm3, %v792_v15 }
 0x726   : > { %2730 = vmatpush3.bf16.msra.mxu1 %v2937_v14  ;;  %2733 = vmatprep.mubr.msk.bf16.mxu1 %vm3097_vm2, %v3096_v13 }
 0x727   : > { %2731 = vmatprep.subr.bf16.mxu1 %v3096_v13 }
 0x72a   : > { %2732 = vmatpush3.bf16.msra.mxu1 %v2938_v16  ;;  %v2504_v16 = vld [vmem:[%s3248_s18 + $0x8] sm:$0xf] }
 0x72b   : > { %2745 = vmatprep.subr.bf16.mxu1 %v3096_v13 }
 0x72d   : > { %2734 = vmatmul.mubr.msk.bf16.vlgmr.msra.gmra.mxu1 %vm464_vm1, %v3289_v25 }
 0x72e   : > { %2747 = vmatprep.mubr.msk.bf16.mxu1 %vm3097_vm2, %v3096_v13 }
 0x7dd   : > { %v1086_v17 = vpop.f32.mrf.mxu1 }
 0x7de   : > { %v1092_v19 = vpack.c.bf16 %v1086_v17, %v1086_v17  ;;  %v1492_v17 = vsel %vm748_vm4, %v2504_v16, 0 }
 0x7df   : > { %v2707_v20 = vpop.f32.mrf.mxu1 }
 0x7e0   : > { %2712 = vmatmul.mubr.msk.bf16.vlgmr.msra.gmra.mxu0 %vm684_vm3, %v1092_v19 }
 0x7e1   : > { %v1089_v21 = vpop.f32.mrf.mxu1  ;;  %2722 = vmatpush3.bf16.msra.mxu0 %v2939_v18  ;;  %2725 = vmatprep.mubr.msk.bf16.mxu0 %vm3097_vm2, %v3096_v13 }
 0x7e2   : > { %2723 = vmatprep.subr.bf16.mxu0 %v3096_v13  ;;  %v2943_v21 = vld [vmem:[%s3243_s0 + $0x44] sm:$0xff]  }
 0x7e3   : > { %v2708_v23 = vpop.f32.mrf.mxu1 }
 0x7e4   : > { %v2944_v23 = vld [vmem:[%s3243_s0 + $0x3c] sm:$0xff]  }
 0x7e5   : > { %v3410_v26 = vpop.f32.mrf.mxu1  ;;  %2724 = vmatpush3.bf16.msra.mxu0 %v2940_v22 }
 0x7e6   : > { %2737 = vmatprep.subr.bf16.mxu0 %v3096_v13 }
 0x7e7   : > { %v2719_v29 = vpop.f32.mrf.mxu1 }
 0x7e8   : > { %2726 = vmatmul.mubr.msk.bf16.vlgmr.msra.gmra.mxu0 %vm464_vm1, %v3289_v25  ;;  %v2947_v29 = vld [vmem:[%s3243_s0 + $0x94] sm:$0xff]  }
 0x7e9   : > { %v1184_v31 = vpop.f32.mrf.mxu1  ;;  %2738 = vmatpush3.bf16.msra.mxu0 %v2941_v27  ;;  %2741 = vmatprep.mubr.msk.bf16.mxu0 %vm3097_vm2, %v3096_v13  ;;  %v2946_v27 = vld [vmem:[%s3243_s0 + $0xdc] sm:$0xff]  }
 0x7ea   : > { %2739 = vmatprep.subr.bf16.mxu0 %v3096_v13 }
 0x7eb   : > { %v2720_v34 = vpop.f32.mrf.mxu1 }
 0x7ec   : > { %v2948_v34 = vld [vmem:[%s3243_s0 + $0x8c] sm:$0xff]  }
 0x7ed   : > { %v1313_v35 = vpop.f32.mrf.mxu1  ;;  %2740 = vmatpush3.bf16.msra.mxu0 %v2942_v32 }
 0x7ee   : > { %v1314_v37 = vadd.f32 %v1313_v35, %v1266_v33  ;;  %2751 = vmatprep.subr.bf16.mxu0 %v3096_v13 }
 0x7ef   : > { %v2735_v38 = vpop.f32.mrf.mxu1 }
 0x7f0   : > { %v1378_v39 = vpack.c.bf16 %v1314_v37, %v1314_v37  ;;  %2742 = vmatmul.mubr.msk.bf16.vlgmr.msra.gmra.mxu0 %vm464_vm1, %v3289_v25  ;;  %v2520_v37 = vld [vmem:[%s3243_s0 + $0x9c] ss:$80 sps:$4 sm:$0xff]  }
 0x7f1   : > { %v1316_v41 = vpop.f32.mrf.mxu1  ;;  %2753 = vmatprep.mubr.msk.bf16.mxu0 %vm3097_vm2, %v3096_v13 }
 0x7f2   : > { %v1383_v42 = vsel %vm684_vm3, %v1378_v39, 0  ;;  %v1667_v39 = vunpack.c.h.bf16 %v2520_v37 }
 0x7f3   : > { %v2736_v43 = vpop.f32.mrf.mxu1  ;;  %2746 = vmatpush3.bf16.xpose.msra.mxu1 %v1383_v42 }
 0x7f4   : > { %2757 = vmatprep.subr.bf16.mxu1 %v3096_v13  ;;  %v1671_v43 = vrot.slane %v1667_v39, %v3314_v36 }
 0x8a0   : > { %v3428_v44 = vpop.f32.mrf.mxu0 }
 0x8a2   : > { %v2713_v46 = vpop.f32.mrf.mxu0 }
 0x8a4   : > { %v1138_v47 = vpop.f32.mrf.mxu0 }
 0x8a6   : > { %v2714_v49 = vpop.f32.mrf.mxu0 }
 0x8a8   : > { %v1256_v51 = vpop.f32.mrf.mxu0 }
 0x8a9   : > { %v1257_v52 = vadd.f32 %v1256_v51, %v1209_v48 }
 0x8aa   : > { %v2727_v54 = vpop.f32.mrf.mxu0 }
 0x8ab   : > { %v1376_v55 = vmul.f32 0.35355338, %v1257_v52 }
 0x8ac   : > { %v1259_v40 = vpop.f32.mrf.mxu0 }
 0x8ad   : > { %v1377_v56 = vpack.c.bf16 %v1376_v55, %v1376_v55  ;;  %v1610_v40 = vunpack.c.l.bf16 %v2520_v37 }
 0x8ae   : > { %v2728_v58 = vpop.f32.mrf.mxu0 }
 0x8af   : > { %2748 = vmatmul.mubr.msk.bf16.vlgmr.msra.gmra.mxu1 %vm684_vm3, %v1377_v56 }
 0x8b0   : > { %v1370_v59 = vpop.f32.mrf.mxu0  ;;  %2759 = vmatprep.mubr.msk.bf16.mxu1 %vm3097_vm2, %v3096_v13  ;;  %2758 = vmatpush3.bf16.msra.mxu1 %v1492_v17 }
 0x8b1   : > { %v1371_v60 = vadd.f32 %v1370_v59, %v1323_v57  ;;  %2771 = vmatprep.subr.bf16.mxu1 %v3096_v13  ;;  %v1553_v57 = vunpack.c.l.bf16 %v3432_v50  ;;  %v1614_v59 = vrot.slane %v1610_v40, %v3314_v36  ;;  %v2536_v40 = vld [vmem:[%s3263_s13 + $0x3] ss:$0 sm:$0xff] }
 0x8b2   : > { %v2743_v61 = vpop.f32.mrf.mxu0 }
 0x8b3   : > { %v1438_v62 = vpack.c.bf16 %v1371_v60, %v1371_v60  ;;  %v1557_v61 = vrot.slane %v1553_v57, %v3314_v36 }
 0x8b4   : > { %v1373_v63 = vpop.f32.mrf.mxu0 }
 0x8b5   : > { %v1443_v0 = vsel %vm748_vm4, %v1438_v62, 0 }
 0x8b6   : > { %v2744_v2 = vpop.f32.mrf.mxu0  ;;  %2752 = vmatpush3.bf16.msra.mxu0 %v1443_v0 }
 0x8b7   : > { %2763 = vmatprep.subr.bf16.mxu0 %v3096_v13 }
 0x96f   : > { %v1419_v3 = vpop.f32.mrf.mxu1 }
 0x970   : > { %v1425_v4 = vsel %vm461_vm5, %v1419_v3, -1e+09 }
 0x971   : > { %v2749_v6 = vpop.f32.mrf.mxu1  ;;  %v1426_v7 = vsel %vm684_vm3, %v1425_v4, -inf }
 0x972   : > { %1427 = vmax.xlane.f32.xlu0 %v1426_v7 }
 0x973   : > { %v1422_v8 = vpop.f32.mrf.mxu1 }
 0x975   : > { %v2750_v9 = vpop.f32.mrf.mxu1 }
 0x9fb   : > { %v1428_v10 = vpop.xlane.xlu0 %1427 }
 0x9fc   : > { %v1429_v11 = vsub.f32 %v1425_v4, %v1428_v10 }
 0x9fe   : > { %v1430_v12 = vmul.f32 1.442695, %v1429_v11 }
 0xa00   : > { %2969 = vpow2.f32 %v1430_v12 }
 0xa0d   : > { %v2970_v14 = vpop.eup %2969 }
 0xa0e   : > { %v1432_v15 = vsel %vm684_vm3, %v2970_v14, 0.0 }
 0xa0f   : > { %1433 = vadd.xlane.f32.xlu1 %v1432_v15 }
 0xa98   : > { %v1434_v18 = vpop.xlane.xlu1 %1433 }
 0xa99   : > { %2971 = vrcp.f32 %v1434_v18 }
 0xaa6   : > { %v2972_v19 = vpop.eup %2971 }
 0xaa7   : > { %v1436_v20 = vmul.f32 %v2972_v19, %v2970_v14  ;;  %v2532_v19 = vld [vmem:[%s3248_s18 + $0xc] sm:$0xf] }
 0xaa9   : > { %v1437_v22 = vpack.c.bf16 %v1436_v20, %v1436_v20  ;;  %v1840_v20 = vsel %vm748_vm4, %v2532_v19, 0 }
 0xaab   : > { %2754 = vmatmul.mubr.msk.bf16.vlgmr.msra.gmra.mxu0 %vm684_vm3, %v1437_v22 }
 0xaac   : > { %2764 = vmatpush3.bf16.msra.mxu0 %v2943_v21  ;;  %2767 = vmatprep.mubr.msk.bf16.mxu0 %vm3097_vm2, %v3096_v13 }
 0xaad   : > { %2765 = vmatprep.subr.bf16.mxu0 %v3096_v13 }
 0xab0   : > { %2766 = vmatpush3.bf16.msra.mxu0 %v2944_v23 }
 0xab1   : > { %2779 = vmatprep.subr.bf16.mxu0 %v3096_v13 }
 0xab3   : > { %2768 = vmatmul.mubr.msk.bf16.vlgmr.msra.gmra.mxu0 %vm464_vm1, %v3289_v25 }
 0xab4   : > { %2780 = vmatpush3.bf16.msra.mxu0 %v2945_v24  ;;  %2783 = vmatprep.mubr.msk.bf16.mxu0 %vm3097_vm2, %v3096_v13 }
 0xab5   : > { %2781 = vmatprep.subr.bf16.mxu0 %v3096_v13 }
 0xab8   : > { %2782 = vmatpush3.bf16.msra.mxu0 %v2946_v27 }
 0xab9   : > { %2793 = vmatprep.subr.bf16.mxu0 %v3096_v13 }
 0xabb   : > { %2784 = vmatmul.mubr.msk.bf16.vlgmr.msra.gmra.mxu0 %vm464_vm1, %v3289_v25 }
 0xabc   : > { %2795 = vmatprep.mubr.msk.bf16.mxu0 %vm3097_vm2, %v3096_v13 }
 0xb6b   : > { %v1479_v28 = vpop.f32.mrf.mxu0 }
 0xb6c   : > { %v1485_v31 = vpack.c.bf16 %v1479_v28, %v1479_v28 }
 0xb6d   : > { %v2755_v32 = vpop.f32.mrf.mxu0 }
 0xb6e   : > { %2760 = vmatmul.mubr.msk.bf16.vlgmr.msra.gmra.mxu1 %vm684_vm3, %v1485_v31 }
 0xb6f   : > { %v1482_v33 = vpop.f32.mrf.mxu0  ;;  %2772 = vmatpush3.bf16.msra.mxu1 %v2947_v29  ;;  %2775 = vmatprep.mubr.msk.bf16.mxu1 %vm3097_vm2, %v3096_v13 }
 0xb70   : > { %2773 = vmatprep.subr.bf16.mxu1 %v3096_v13 }
 0xb71   : > { %v2756_v35 = vpop.f32.mrf.mxu0 }
 0xb73   : > { %v1604_v38 = vpop.f32.mrf.mxu0  ;;  %2774 = vmatpush3.bf16.msra.mxu1 %v2948_v34  ;;  %v2534_v34 = vld [vmem:[%s3263_s13 + $0x4] ss:$0 sm:$0xff] }
 0xb74   : > { %2787 = vmatprep.subr.bf16.mxu1 %v3096_v13  ;;  %v1605_v2 = vadd.f32 %v1604_v38, %v1557_v61  ;;  %v2953_v61 = vld [vmem:[%s3258_s29 + $0x28] sm:$0xff]  }
 0xb75   : > { %v2769_v41 = vpop.f32.mrf.mxu0 }
 0xb76   : > { %2776 = vmatmul.mubr.msk.bf16.vlgmr.msra.gmra.mxu1 %vm464_vm1, %v3289_v25  ;;  %v1182_v25 = vadd.f32 %v3410_v26, %v3428_v44  ;;  %v1724_v6 = vmul.f32 0.35355338, %v1605_v2  ;;  %v2957_v2 = vld [vmem:[%s3258_s29 + $0x8] sm:$0xff]  }
 0xb77   : > { %v1607_v42 = vpop.f32.mrf.mxu0  ;;  %2789 = vmatprep.mubr.msk.bf16.mxu1 %vm3097_vm2, %v3096_v13 }
 0xb78   : > { %v1725_v50 = vpack.c.bf16 %v1724_v6, %v1724_v6 }
 0xb79   : > { %v2770_v45 = vpop.f32.mrf.mxu0 }
 0xb7b   : > { %v1718_v46 = vpop.f32.mrf.mxu0 }
 0xb7c   : > { %v1719_v47 = vadd.f32 %v1718_v46, %v1671_v43 }
 0xb7d   : > { %v2785_v48 = vpop.f32.mrf.mxu0 }
 0xb7e   : > { %v1786_v49 = vpack.c.bf16 %v1719_v47, %v1719_v47 }
 0xb7f   : > { %v1721_v51 = vpop.f32.mrf.mxu0 }
 0xb80   : > { %v1791_v52 = vsel %vm748_vm4, %v1786_v49, 0  ;;  %v2949_v49 = vld [vmem:[%s3253_s16 + $0x8] sm:$0xff]  }
 0xb81   : > { %v2786_v53 = vpop.f32.mrf.mxu0  ;;  %2794 = vmatpush3.bf16.msra.mxu0 %v1791_v52 }
 0xb82   : > { %2805 = vmatprep.subr.bf16.mxu0 %v3096_v13 }
 0xc2e   : > { %v1528_v54 = vpop.f32.mrf.mxu1 }
 0xc2f   : > { %v1534_v55 = vadd.f32 %v1528_v54, %v1182_v25  ;;  %v2535_v54 = vld [vmem:[%s3263_s13 + $0x2] ss:$0 sm:$0xff] }
 0xc30   : > { %v2761_v56 = vpop.f32.mrf.mxu1 }
 0xc32   : > { %v1531_v58 = vpop.f32.mrf.mxu1 }
 0xc34   : > { %v2762_v60 = vpop.f32.mrf.mxu1 }
 0xc35   : > { %v2952_v60 = vld [vmem:[%s3258_s29 + $0x30] sm:$0xff]  }
 0xc36   : > { %v1661_v62 = vpop.f32.mrf.mxu1 }
 0xc37   : > { %v1662_v63 = vadd.f32 %v1661_v62, %v1614_v59  ;;  %v2951_v59 = vld [vmem:[%s3258_s29 + $0x38] sm:$0xff]   ;;  %v2954_v62 = vld [vmem:[%s3258_s29 + $0x20] sm:$0xff]  }
 0xc38   : > { %v2777_v0 = vpop.f32.mrf.mxu1 }
 0xc39   : > { %v1726_v3 = vpack.c.bf16 %v1662_v63, %v1662_v63  ;;  %v2955_v63 = vld [vmem:[%s3258_s29 + $0x18] sm:$0xff]   ;;  %v2956_v0 = vld [vmem:[%s3258_s29 + $0x10] sm:$0xff]  }
 0xc3a   : > { %v1664_v4 = vpop.f32.mrf.mxu1 }
 0xc3b   : > { %v1731_v26 = vsel %vm684_vm3, %v1726_v3, 0  ;;  %v2958_v3 = vld [vmem:[%s3258_s29] sm:$0xff]   ;;  %v1920_v4 = vld [vmem:[%s3253_s16 + $0x10] sm:$0x1] }
 0xc3c   : > { %v2778_v44 = vpop.f32.mrf.mxu1  ;;  %2788 = vmatpush3.bf16.xpose.msra.mxu1 %v1731_v26  ;;  %v1921_v26 = vunpack.c.l.bf16 %v1920_v4 }
 0xc3d   : > { %2799 = vmatprep.subr.bf16.mxu1 %v3096_v13 }
 0xc3e   : > { %v1925_v44 = vrot.slane %v1921_v26, %v3314_v36 }
 0xc43   : > { %2790 = vmatmul.mubr.msk.bf16.vlgmr.msra.gmra.mxu1 %vm684_vm3, %v1725_v50 }
 0xc44   : > { %2801 = vmatprep.mubr.msk.bf16.mxu1 %vm3097_vm2, %v3096_v13  ;;  %2800 = vmatpush3.bf16.msra.mxu1 %v1840_v20 }
 0xc45   : > { %2813 = vmatprep.subr.bf16.mxu1 %v3096_v13 }
 0xd03   : > { %v1767_v7 = vpop.f32.mrf.mxu1 }
 0xd04   : > { %v1773_v8 = vsel %vm461_vm5, %v1767_v7, -1e+09 }
 0xd05   : > { %v2791_v9 = vpop.f32.mrf.mxu1  ;;  %v1774_v10 = vsel %vm684_vm3, %v1773_v8, -inf }
 0xd06   : > { %1775 = vmax.xlane.f32.xlu0 %v1774_v10 }
 0xd07   : > { %v1770_v11 = vpop.f32.mrf.mxu1 }
 0xd09   : > { %v2792_v12 = vpop.f32.mrf.mxu1 }
 0xd8f   : > { %v1776_v14 = vpop.xlane.xlu0 %1775 }
 0xd90   : > { %v1777_v15 = vsub.f32 %v1773_v8, %v1776_v14 }
 0xd92   : > { %v1778_v16 = vmul.f32 1.442695, %v1777_v15 }
 0xd94   : > { %2973 = vpow2.f32 %v1778_v16 }
 0xda1   : > { %v2974_v17 = vpop.eup %2973 }
 0xda2   : > { %v1780_v18 = vsel %vm684_vm3, %v2974_v17, 0.0 }
 0xda3   : > { %1781 = vadd.xlane.f32.xlu1 %v1780_v18 }
 0xe2c   : > { %v1782_v30 = vpop.xlane.xlu1 %1781 }
 0xe2d   : > { %2975 = vrcp.f32 %v1782_v30 }
 0xe3a   : > { %v2976_v21 = vpop.eup %2975 }
 0xe3b   : > { %v1784_v22 = vmul.f32 %v2976_v21, %v2974_v17  ;;  %v2095_v17 = vld [vmem:[%s3258_s29 + $0x40] sm:$0x1] }
 0xe3c   : > { %v2096_v18 = vunpack.c.l.bf16 %v2095_v17 }
 0xe3d   : > { %v1785_v23 = vpack.c.bf16 %v1784_v22, %v1784_v22 }
 0xe3e   : > { %v2100_v19 = vrot.slane %v2096_v18, %v3314_v36 }
 0xe3f   : > { %2796 = vmatmul.mubr.msk.bf16.vlgmr.msra.gmra.mxu0 %vm684_vm3, %v1785_v23 }
 0xe40   : > { %2809 = vmatprep.mubr.msk.bf16.mxu0 %vm3097_vm2, %v3096_v13  ;;  %2806 = vmatpush3.bf16.msra.mxu0 %v2949_v49 }
 0xe41   : > { %2807 = vmatprep.subr.bf16.mxu0 %v3096_v13 }
 0xeff   : > { %v1827_v24 = vpop.f32.mrf.mxu0 }
 0xf00   : > { %v1833_v27 = vpack.c.bf16 %v1827_v24, %v1827_v24 }
 0xf01   : > { %v2797_v28 = vpop.f32.mrf.mxu0 }
 0xf02   : > { %2802 = vmatmul.mubr.msk.bf16.vlgmr.msra.gmra.mxu1 %vm684_vm3, %v1833_v27 }
 0xf03   : > { %v1830_v29 = vpop.f32.mrf.mxu0  ;;  %2829 = vmatprep.mubr.msk.bf16.mxu1 %vm3097_vm2, %v3096_v13  ;;  %2814 = vmatpush3.bf16.msra.mxu1 %v2951_v59 }
 0xf04   : > { %2815 = vmatprep.subr.bf16.mxu1 %v3096_v13 }
 0xf05   : > { %v2798_v31 = vpop.f32.mrf.mxu0 }
 0xf07   : > { %2816 = vmatpush3.bf16.msra.mxu1 %v2952_v60 }
 0xf08   : > { %2817 = vmatprep.subr.bf16.mxu1 %v3096_v13 }
 0xf0b   : > { %2818 = vmatpush3.bf16.msra.mxu1 %v2953_v61 }
 0xf0c   : > { %2819 = vmatprep.subr.bf16.mxu1 %v3096_v13 }
 0xf0f   : > { %2820 = vmatpush3.bf16.msra.mxu1 %v2954_v62 }
 0xf10   : > { %2821 = vmatprep.subr.bf16.mxu1 %v3096_v13 }
 0xf13   : > { %2822 = vmatpush3.bf16.msra.mxu1 %v2955_v63 }
 0xf14   : > { %2823 = vmatprep.subr.bf16.mxu1 %v3096_v13 }
 0xf17   : > { %2824 = vmatpush3.bf16.msra.mxu1 %v2956_v0 }
 0xf18   : > { %2825 = vmatprep.subr.bf16.mxu1 %v3096_v13 }
 0xf1b   : > { %2826 = vmatpush3.bf16.msra.mxu1 %v2957_v2 }
 0xf1c   : > { %2827 = vmatprep.subr.bf16.mxu1 %v3096_v13 }
 0xf1f   : > { %2828 = vmatpush3.bf16.msra.mxu1 %v2958_v3 }
 0xfc2   : > { %v1876_v32 = vpop.f32.mrf.mxu1 }
 0xfc3   : > { %v1882_v33 = vadd.f32 %v1876_v32, %v1534_v55 }
 0xfc4   : > { %v2803_v35 = vpop.f32.mrf.mxu1 }
 0xfc5   : > { %v1883_v37 = vadd.f32 %v1882_v33, %v3270_v5  ;;  %v2950_v5 = vld [vmem:[%s3253_s16] sm:$0xff]  }
 0xfc6   : > { %v1879_v38 = vpop.f32.mrf.mxu1  ;;  %2808 = vmatpush3.bf16.msra.mxu0 %v2950_v5 }
 0xfc7   : > { %v3509_v39 = vadd.f32 %v2534_v34, %v1883_v37 }
 0xfc8   : > { %v2804_v41 = vpop.f32.mrf.mxu1 }
 0xfc9   : > { %v1892_v42 = vsel %vm464_vm1, %v3509_v39, 0.0 }
 0xfca   : > { %1893 = vadd.xlane.f32.xlu0 %v1892_v42 }
0x1053   : > { %v1894_v43 = vpop.xlane.xlu0 %1893 }
0x1054   : > { %v1895_v45 = vmul.f32 0.03125, %v1894_v43 }
0x1056   : > { %v1896_v46 = vsub.f32 %v3509_v39, %v1895_v45 }
0x1058   : > { %v1897_v47 = vmul.f32 %v1896_v46, %v1896_v46 }
0x105a   : > { %v1898_v48 = vsel %vm464_vm1, %v1897_v47, 0.0 }
0x105b   : > { %1899 = vadd.xlane.f32.xlu1 %v1898_v48 }
0x10e4   : > { %v1900_v51 = vpop.xlane.xlu1 %1899 }
0x10e5   : > { %v1901_v52 = vmul.f32 0.03125, %v1900_v51 }
0x10e7   : > { %v1902_v53 = vadd.f32 1e-05, %v1901_v52 }
0x10e9   : > { %2977 = vrsqrt.f32 %v1902_v53 }
0x10f6   : > { %v2978_v25 = vpop.eup %2977 }
0x10f7   : > { %v1904_v55 = vmul.f32 %v2978_v25, %v1896_v46 }
0x10f9   : > { %v1909_v56 = vmul.f32 %v2535_v54, %v1904_v55 }
0x10fb   : > { %v1914_v57 = vadd.f32 %v2536_v40, %v1909_v56 }
0x10fd   : > { %v1915_v58 = vpack.c.bf16 %v1914_v57, %v1914_v57 }
0x10ff   : > { %2810 = vmatmul.mubr.msk.bf16.vlgmr.msra.gmra.mxu0 %vm464_vm1, %v1915_v58 }
0x11bf   : > { %v1975_v6 = vpop.f32.mrf.mxu0 }
0x11c0   : > { %v1976_v50 = vadd.f32 %v1975_v6, %v1925_v44 }
0x11c1   : > { %v2811_v7 = vpop.f32.mrf.mxu0 }
0x11c2   : > { %v2540_v8 = vmul.f32 -1.702, %v1976_v50 }
0x11c3   : > { %v1978_v9 = vpop.f32.mrf.mxu0 }
0x11c4   : > { %v1983_v10 = vmul.f32 1.442695, %v2540_v8 }
0x11c5   : > { %v2812_v11 = vpop.f32.mrf.mxu0 }
0x11c6   : > { %2979 = vpow2.f32 %v1983_v10 }
0x11d3   : > { %v2980_v12 = vpop.eup %2979 }
0x11d4   : > { %v1985_v14 = vadd.f32 1.0, %v2980_v12 }
0x11d6   : > { %2981 = vrcp.f32 %v1985_v14 }
0x11e3   : > { %v2982_v15 = vpop.eup %2981 }
0x11e4   : > { %v1988_v13 = vmul.f32 %v2982_v15, %v1976_v50 }
0x11e6   : > { %v1989_v16 = vpack.c.bf16 %v1988_v13, %v1988_v13 }
0x11e8   : > { %2830 = vmatmul.mubr.bf16.vlgmr.msra.gmra.mxu1 %v1989_v16 }
0x12a8   : > { %v2088_v20 = vpop.f32.mrf.mxu1 }
0x12a9   : > { %v2094_v30 = vadd.f32 %v2088_v20, %v3509_v39 }
0x12aa   : > { %v2831_v21 = vpop.f32.mrf.mxu1  ;;  %2106 = sbr.rel (%p2549_p6) target bundleno = 5488 (0x1570), region = 64 }
0x12ab   : > { %v2101_v22 = vadd.f32 %v2100_v19, %v2094_v30 }
0x12ac   : > { %v2091_v23 = vpop.f32.mrf.mxu1 }
0x12ad   : > { %2102 = vst.msk [vmem:[#allocation2] sm:$0xff] %vm464_vm1, %v2101_v22 }
0x12ae   : > { %v2832_v24 = vpop.f32.mrf.mxu1 }
0x12af   : > { %v3098_v27 = vmov 0.0   ;;  %vm3099_vm6 = vmmov 0   ;;  %v2108_v28 = vstv %s2107_s1  ;;  %vm2187_vm8 = vcmask 253952   ;;  %v2983_v41 = vld [vmem:[%s3620_s9 + $0x8] sm:$0xff]   ;;  %v2185_v47 = vld [vmem:[%s3619_s8] sm:$0x1] }
0x12b0   : > { %2833 = vmatprep.subr.mxu0 %v3098_v27  ;;  %2835 = vmatprep.mubr.msk.f32.mxu0 %vm3099_vm6, %v3098_v27  ;;  %vm2109_vm7 = vcmp.eq.s32.totalorder %v3346_v1, %v2108_v28  ;;  %v2984_v1 = vld [vmem:[%s3620_s9] sm:$0xff]  }
0x12b1   : > { %2834 = vmatpush3.msra.mxu0 %v2101_v22  ;;  %2838 = vmatprep.subr.bf16.mxu1 %v3098_v27  ;;  %v2550_v29 = vsel %vm2109_vm7, 1.0, %v3098_v27  ;;  %v2186_v49 = vld [vmem:[%s3619_s8 + $0x1] sm:$0x1] }
0x12b2   : > { %2842 = vmatprep.mubr.msk.bf16.mxu1 %vm3099_vm6, %v3098_v27  ;;  %2836 = vmatmul.mubr.msk.f32.vlgmr.msra.gmra.mxu0 %vm684_vm3, %v2550_v29 }
0x12b3   : > { %2839 = vmatpush3.bf16.msra.mxu1 %v2983_v41 }
0x12b4   : > { %2840 = vmatprep.subr.bf16.mxu1 %v3098_v27 }
0x12b7   : > { %2841 = vmatpush3.bf16.msra.mxu1 %v2984_v1 }
0x1372   : > { %v2181_v31 = vpop.f32.mrf.mxu0 }
0x1373   : > { %v2188_v32 = vsel %vm2187_vm8, %v2181_v31, 0.0 }
0x1374   : > { %2189 = vadd.xlane.f32.xlu0 %v2188_v32  ;;  %v2837_v33 = vpop.f32.mrf.mxu0 }
0x13fd   : > { %v2190_v34 = vpop.xlane.xlu0 %2189 }
0x13fe   : > { %v2191_v35 = vmul.f32 0.03125, %v2190_v34 }
0x1400   : > { %v2192_v37 = vsub.f32 %v2181_v31, %v2191_v35 }
0x1402   : > { %v2193_v38 = vmul.f32 %v2192_v37, %v2192_v37 }
0x1404   : > { %v2194_v39 = vsel %vm2187_vm8, %v2193_v38, 0.0 }
0x1405   : > { %2195 = vadd.xlane.f32.xlu0 %v2194_v39 }
0x148e   : > { %v2196_v42 = vpop.xlane.xlu0 %2195 }
0x148f   : > { %v2197_v43 = vmul.f32 0.03125, %v2196_v42 }
0x1491   : > { %v2198_v45 = vadd.f32 1e-05, %v2197_v43 }
0x1493   : > { %2985 = vrsqrt.f32 %v2198_v45 }
0x14a0   : > { %v2986_v46 = vpop.eup %2985 }
0x14a1   : > { %v2200_v48 = vmul.f32 %v2986_v46, %v2192_v37 }
0x14a3   : > { %v2201_v5 = vmul.f32 %v2200_v48, %v2185_v47 }
0x14a5   : > { %v2202_v51 = vadd.f32 %v2201_v5, %v2186_v49 }
0x14a7   : > { %v2203_v52 = vpack.c.bf16 %v2202_v51, %v2202_v51 }
0x14a9   : > { %2843 = vmatmul.mubr.msk.bf16.vlgmr.msra.gmra.mxu1 %vm464_vm1, %v2203_v52 }
0x1569   : > { %v2257_v53 = vpop.f32.mrf.mxu1 }
0x156a   : > { %v2266_v25 = vrot.slane %v2257_v53, %v3314_v36 }
0x156b   : > { %v2844_v54 = vpop.f32.mrf.mxu1 }
0x156c   : > { %2267 = vst.msk [vmem:[%s415_s30] sm:$0xff] %vm464_vm1, %v2266_v25 }
0x156d   : > { %v2260_v55 = vpop.f32.mrf.mxu1 }
0x156f   : > { %v2845_v40 = vpop.f32.mrf.mxu1 }
0x1570 PF: > { %s2556_s16 = sshll.u32 %s3081_s21, 7  ;;  %s3650_s11 = sld [smem:[#allocation20_spill]] }
0x1571   : > { %s2282_s28 = sshll.u32 %s415_s30, 4  ;;  %s3651_s13 = sand.u32 1, %s3069_s19   ;;  %s2283_s28 = int_to_ptr.vmem [resolvable:$true] %s2282_s28 }
0x1572   : > { %s2269_s10 = scalar_lea.sflag [#allocation6], %s3651_s13  ;;  %s2999_s23 = scalar_lea.vmem %s2283_s28, 128 }
0x1573   : > { %p3000_p7 = scmp.ne.s32.totalorder %s2283_s28, %s2999_s23  ;;  %s3100_s1 = smov [#allocation5]  }
0x1574   : > { %s3003_s18 = sshll.u32 %s3100_s1, 4  ;;  %s3004_s18 = int_to_ptr.vmem [resolvable:$false] %s3003_s18 }
0x1575   : > { %p3001_p9 = pnand %p3000_p7, %p3208_p8  ;;  %s3005_s0 = scalar_lea.vmem %s3004_s18, 256 }
0x1576   : > { %s2280_s22 = scalar_lea.hbm %s3650_s11, %s2556_s16  ;;  %p3006_p11 = scmp.lt.s32.totalorder %s2283_s28, %s3004_s18 }
0x1577   : > { %p3002_p10 = pneg %p3001_p9  ;;  %p3007_p12 = scmp.lt.s32.totalorder %s3005_s0, %s2999_s23 }
0x1579   : > { %p3008_p13 = por %p3007_p12, %p3006_p11 }
0x157b   : > { %p3009_p1 = pnand %p3008_p13, %p3002_p10 }
0x157d   : > { %3012 = shalt.err (!%p3009_p1)
}
0x157e   : > { %s3013_s21 = scalar_lea.hbm %s2280_s22, 128  ;;  %s3017_s20 = scalar_lea.hbm %s3650_s11, 256 }
0x157f   : > { %p3014_p2 = scmp.ne.s32.totalorder %s2280_s22, %s3013_s21  ;;  %p3018_p5 = scmp.lt.s32.totalorder %s2280_s22, %s3650_s11 }
0x1580   : > { %p3019_p6 = scmp.lt.s32.totalorder %s3017_s20, %s3013_s21 }
0x1581   : > { %p3015_p3 = pnand %p3014_p2, %p3208_p8 }
0x1582   : > { %p3020_p7 = por %p3019_p6, %p3018_p5 }
0x1583   : > { %p3016_p4 = pneg %p3015_p3 }
0x1585   : > { %p3021_p9 = pnand %p3020_p7, %p3016_p4 }
0x1587   : > { %3024 = shalt.err (!%p3021_p9)
}
0x1588   : > { %2849 = dma.vmem_to_hbm [thread:$0]  (%p3208_p8), %s2283_s28, 128, %s2280_s22, %s2269_s10  }
0x1589 PF: > { %s3652_s29 = sld [smem:[#allocation13_spill]] }
0x158a   : > { %s3653_s14 = sld [smem:[#allocation9_spill]] }
0x158f   : > { %p2855_p10 = scmp.ge.s32.totalorder %s3652_s29, 2 }
0x1590   : > { %s2294_s16 = sand.u32 1, %s3653_s14  }
0x1591   : > { %p2852_p11 = pnand %p2855_p10, %p3218_p0  ;;  %s2295_s26 = scalar_lea.sflag [#allocation6], %s2294_s16 }
0x1593   : > { %p2853_p12 = pneg %p2852_p11 }
0x1595   : > { %3060 = dma.done.wait (%p2853_p12), %s2295_s26, 128  }
0x1596   : > { %3062 = vsyncadd (%p2853_p12), %s2295_s26, 4294967168  ;;  %s29_s24 = sadd.s32 1, %s3652_s29   ;;  %s3655_s25 = sld [smem:[#allocation10_spill]] }
0x1597   : > { %p26_p13 = scmp.ge.s32.totalorder %s29_s24, 6   ;;  %s3656_s0 = sld [smem:[#allocation18_spill]] }
0x1598   : > { %s3657_s20 = sld [smem:[#allocation11_spill]]  ;;  %s3661_s18 = smov %s3069_s19 }
0x1599   : > { %s3658_s21 = sld [smem:[#allocation12_spill]]  ;;  %28 = sbr.rel (!%p26_p13) target bundleno = 21 (0x15), region = 128 }
0x159a   : > { %s3659_s22 = sld [smem:[#allocation14_spill]] }
0x159b   : > { %s3660_s23 = sld [smem:[#allocation16_spill]] }
0x159c   : > { %s3662_s19 = smov %s3655_s25 }
0x159e   :  { %2300 = vsyncpa [#allocation6], 1 }
0x159f   :  { %2302 = vsyncpa [#allocation6 + $0x1], 1 }

</bundles_post_ra>
